<compile_context>
chip_gen: v6e
topology: v6e:2x2x1
jax: 0.10.0
libtpu: 0.0.40
codegen_flags: <defaults>
</compile_context>

<pallas_src>
import jax
import jax.numpy as jnp
import numpy as np
from jax.experimental import pallas as pl
from jax.experimental.pallas import tpu as pltpu

# ---- hyper-parameters mirroring the PyTorch module's __init__ (args.*) ----------
IN_PLANES   = 4      # C (in_planes)
SEQ_LEN     = 16     # T (must be even for Splitting)
BATCH       = 2
KERNEL      = 3      # args.kernel   (first conv of P / U)
K2          = 3      # second conv of P / U has a hard-coded kernel_size=3
DILATION    = 1      # args.dilation
HIDDEN_MULT = 2      # args.hidden_size  -> hidden channels = C * hidden
HIDDEN      = IN_PLANES * HIDDEN_MULT
PAD         = DILATION * (KERNEL - 1) // 2 + 1     # ReplicationPad1d amount
HALF_LEN    = SEQ_LEN // 2                         # Th
PAD_LEN     = HALF_LEN + 2 * PAD                   # length after replication pad
L1          = PAD_LEN - DILATION * (KERNEL - 1)    # length after first conv
NEG_SLOPE   = 0.01

# TODO(synk): args.INN=True ("modified") branch with phi/psi and the simple_lifting
#             Conv2d variant are not implemented; this kernel covers the default path.


# ---------------------------------- kernel ---------------------------------------
def lifting_kernel(xe_ref, xo_ref, w1_ref, w2_ref, b_ref, out_ref, pad_ref):
    """Per-batch lifting step.  All refs are channels-last (length on sublanes,
    channels on lanes).  pad_ref is a reused VMEM scratch of shape (PAD_LEN, C)."""
    C, H = IN_PLANES, HIDDEN
    x_even = xe_ref[...].astype(jnp.float32)          # (HALF_LEN, C)
    x_odd  = xo_ref[...].astype(jnp.float32)

    def fill_replication_pad(x):
        # ReplicationPad1d along length, written into the scratch (no concatenate).
        pad_ref[PAD:PAD + HALF_LEN, :] = x
        pad_ref[0:PAD, :] = jnp.broadcast_to(x[0:1, :], (PAD, C))
        pad_ref[PAD + HALF_LEN:PAD_LEN, :] = jnp.broadcast_to(
            x[HALF_LEN - 1:HALF_LEN, :], (PAD, C))

    def conv_vpu(src, w_ref, row0, k_taps, cin, cout, dil, bias):
        # Channels are tiny (4 / 8): a pure-VPU broadcast multiply-accumulate is
        # strictly faster than driving the MXU at <4% contraction utilization.
        lin = src.shape[0]
        lout = lin - dil * (k_taps - 1)
        acc = jnp.zeros((lout, cout), jnp.float32) + bias
        for k in range(k_taps):                               # static unroll
            xs = src[k * dil:k * dil + lout, :]               # (lout, cin)
            for ci in range(cin):                             # static unroll
                acc = acc + xs[:, ci:ci + 1] * w_ref[row0 + k * cin + ci, :]
        return acc

    def pu_branch(br):
        b1 = b_ref[br, 0:H]                                   # (H,)
        b2 = b_ref[br, H:H + C]                               # (C,)
        h = conv_vpu(pad_ref, w1_ref, br * KERNEL * C, KERNEL, C, H, DILATION, b1)
        h = jnp.where(h > 0, h, NEG_SLOPE * h)                # LeakyReLU(0.01)
        # TODO(synk): Dropout(p=0.5) is the identity in eval mode; training RNG mask
        #             is not implemented.
        y = conv_vpu(h, w2_ref, br * K2 * H, K2, H, C, 1, b2)
        return jnp.tanh(y)

    fill_replication_pad(x_even)
    d = x_odd - pu_branch(0)           # predictor P (branch 0 of the packed slabs)
    fill_replication_pad(d)
    c = x_even + pu_branch(1)          # updater   U (branch 1 of the packed slabs)

    # Single fused, lane-denser output store: [:, 0:C] = c, [:, C:2C] = d.
    out_ref[...] = jnp.concatenate([c, d], axis=-1).astype(out_ref.dtype)


# --------------------------------- wrapper ----------------------------------------
def _conv_rows(w):
    # torch Conv1d weight (Cout, Cin, K) -> rows (K*Cin, Cout) ordered [k][ci]
    cout, cin, k = w.shape
    return jnp.transpose(w, (2, 1, 0)).reshape(k * cin, cout)


def pack_params(p):
    """Pack the 8 small conv weights/biases into 3 stacked f32 slabs (P=branch0, U=branch1)."""
    w1_all = jnp.concatenate([_conv_rows(p["p_w1"]), _conv_rows(p["u_w1"])], axis=0)
    w2_all = jnp.concatenate([_conv_rows(p["p_w2"]), _conv_rows(p["u_w2"])], axis=0)
    b_all = jnp.stack([jnp.concatenate([p["p_b1"], p["p_b2"]]),
                       jnp.concatenate([p["u_b1"], p["u_b2"]])], axis=0)
    return (w1_all.astype(jnp.float32), w2_all.astype(jnp.float32),
            b_all.astype(jnp.float32))


def lifting_scheme_forward(x, params):
    B, T, C = x.shape
    Th = T // 2
    # Splitting (cheap XLA strided slices; total DMA into the kernel == |x| exactly).
    x_even = x[:, 0::2, :]
    x_odd = x[:, 1::2, :]
    w1_all, w2_all, b_all = pack_params(params)

    cd = pl.pallas_call(
        lifting_kernel,
        out_shape=jax.ShapeDtypeStruct((B, Th, 2 * C), x.dtype),
        grid=(B,),
        in_specs=[
            pl.BlockSpec((None, Th, C), lambda b: (b, 0, 0)),
            pl.BlockSpec((None, Th, C), lambda b: (b, 0, 0)),
            pl.BlockSpec((2 * KERNEL * IN_PLANES, HIDDEN), lambda b: (0, 0)),
            pl.BlockSpec((2 * K2 * HIDDEN, IN_PLANES), lambda b: (0, 0)),
            pl.BlockSpec((2, HIDDEN + IN_PLANES), lambda b: (0, 0)),
        ],
        out_specs=pl.BlockSpec((None, Th, 2 * C), lambda b: (b, 0, 0)),
        scratch_shapes=[pltpu.VMEM((PAD_LEN, IN_PLANES), jnp.float32)],
        compiler_params=pltpu.CompilerParams(dimension_semantics=("parallel",)),
    )(x_even, x_odd, w1_all, w2_all, b_all)

    c = cd[..., :C]
    d = cd[..., C:]
    # Match the PyTorch module's return layout (B, C, T//2).  If the downstream
    # consumer can take channels-last, drop these transposes and return c, d directly.
    return jnp.transpose(c, (0, 2, 1)), jnp.transpose(d, (0, 2, 1))


# --------------------------- pure-JAX reference ------------------------------------
def _reference(x, p):
    hp = jax.lax.Precision.HIGHEST

    def conv1d(xx, w, b, dil):          # xx: (B, L, Cin), w: (Cout, Cin, K)
        cout, cin, k = w.shape
        lout = xx.shape[1] - dil * (k - 1)
        y = sum(jnp.einsum("blc,oc->blo", xx[:, i * dil:i * dil + lout, :],
                           w[:, :, i], precision=hp) for i in range(k))
        return y + b

    def branch(inp, w1, b1, w2, b2):
        xp = jnp.pad(inp, ((0, 0), (PAD, PAD), (0, 0)), mode="edge")
        h = conv1d(xp, w1, b1, DILATION)
        h = jnp.where(h > 0, h, NEG_SLOPE * h)
        return jnp.tanh(conv1d(h, w2, b2, 1))

    xe, xo = x[:, 0::2, :], x[:, 1::2, :]
    d = xo - branch(xe, p["p_w1"], p["p_b1"], p["p_w2"], p["p_b2"])
    c = xe + branch(d, p["u_w1"], p["u_b1"], p["u_w2"], p["u_b2"])
    return jnp.transpose(c, (0, 2, 1)), jnp.transpose(d, (0, 2, 1))


# ------------------------------------ main ------------------------------------------
if __name__ == "__main__":
    assert L1 - (K2 - 1) == HALF_LEN, "conv lengths must restore T//2"

    key = jax.random.PRNGKey(0)
    ks = jax.random.split(key, 9)

    # Parameters stored in native PyTorch Conv1d layout: weight (Cout, Cin, K), bias (Cout,)
    params = dict(
        p_w1=0.3 * jax.random.normal(ks[0], (HIDDEN, IN_PLANES, KERNEL), jnp.float32),
        p_b1=0.1 * jax.random.normal(ks[1], (HIDDEN,), jnp.float32),
        p_w2=0.3 * jax.random.normal(ks[2], (IN_PLANES, HIDDEN, K2), jnp.float32),
        p_b2=0.1 * jax.random.normal(ks[3], (IN_PLANES,), jnp.float32),
        u_w1=0.3 * jax.random.normal(ks[4], (HIDDEN, IN_PLANES, KERNEL), jnp.float32),
        u_b1=0.1 * jax.random.normal(ks[5], (HIDDEN,), jnp.float32),
        u_w2=0.3 * jax.random.normal(ks[6], (IN_PLANES, HIDDEN, K2), jnp.float32),
        u_b2=0.1 * jax.random.normal(ks[7], (IN_PLANES,), jnp.float32),
    )
    x = jax.random.normal(ks[8], (BATCH, SEQ_LEN, IN_PLANES), jnp.float32)

    c, d = jax.block_until_ready(lifting_scheme_forward(x, params))

    ref_c, ref_d = _reference(x, params)
    np.testing.assert_allclose(np.asarray(c), np.asarray(ref_c), rtol=1e-4, atol=1e-4)
    np.testing.assert_allclose(np.asarray(d), np.asarray(ref_d), rtol=1e-4, atol=1e-4)

    assert c.shape == (BATCH, IN_PLANES, SEQ_LEN // 2)
    assert d.shape == (BATCH, IN_PLANES, SEQ_LEN // 2)
    print("KERNEL_OK")
</pallas_src>

<mosaic_0001>
module attributes {stable_mosaic.version = 11 : i64} {
  func.func @lifting_kernel(%arg0: i32, %arg1: memref<1x8x4xf32, #tpu.memory_space<vmem>>, %arg2: memref<1x8x4xf32, #tpu.memory_space<vmem>>, %arg3: memref<24x8xf32, #tpu.memory_space<vmem>>, %arg4: memref<48x4xf32, #tpu.memory_space<vmem>>, %arg5: memref<2x12xf32, #tpu.memory_space<vmem>>, %arg6: memref<1x8x8xf32, #tpu.memory_space<vmem>>, %arg7: memref<12x4xf32, #tpu.memory_space<vmem>>) attributes {dimension_semantics = [#tpu.dimension_semantics<parallel>], iteration_bounds = array<i64: 2>, scalar_prefetch = 0 : i64, scratch_operands = 1 : i64, tpu.core_type = #tpu.core_type<tc>, window_params = [{transform_indices = @transform_0, window_bounds = array<i64: 1, 8, 4>}, {transform_indices = @transform_1, window_bounds = array<i64: 1, 8, 4>}, {pipeline_mode = #tpu.pipeline_mode<synchronous>, transform_indices = @transform_2, window_bounds = array<i64: 24, 8>}, {pipeline_mode = #tpu.pipeline_mode<synchronous>, transform_indices = @transform_3, window_bounds = array<i64: 48, 4>}, {pipeline_mode = #tpu.pipeline_mode<synchronous>, transform_indices = @transform_4, window_bounds = array<i64: 2, 12>}, {transform_indices = @transform_5, window_bounds = array<i64: 1, 8, 8>}]} {
    %c0 = arith.constant 0 : index
    %c0_0 = arith.constant 0 : index
    %c0_1 = arith.constant 0 : index
    %0 = vector.load %arg1[%c0, %c0_0, %c0_1] : memref<1x8x4xf32, #tpu.memory_space<vmem>>, vector<1x8x4xf32>
    %1 = vector.shape_cast %0 : vector<1x8x4xf32> to vector<8x4xf32>
    %c0_2 = arith.constant 0 : index
    %c0_3 = arith.constant 0 : index
    %c0_4 = arith.constant 0 : index
    %2 = vector.load %arg2[%c0_2, %c0_3, %c0_4] : memref<1x8x4xf32, #tpu.memory_space<vmem>>, vector<1x8x4xf32>
    %3 = vector.shape_cast %2 : vector<1x8x4xf32> to vector<8x4xf32>
    %c2 = arith.constant 2 : index
    %c0_5 = arith.constant 0 : index
    %4 = vector.load %arg7[%c2, %c0_5] : memref<12x4xf32, #tpu.memory_space<vmem>>, vector<8x4xf32>
    tpu.vector_store %arg7[%c2, %c0_5], %1 {strides = array<i32>} : memref<12x4xf32, #tpu.memory_space<vmem>>, vector<8x4xf32>,
    %5 = vector.extract_strided_slice %1 {offsets = [0, 0], sizes = [1, 4], strides = [1, 1]} : vector<8x4xf32> to vector<1x4xf32>
    %6 = vector.shape_cast %5 : vector<1x4xf32> to vector<1x4xf32>
    %7 = vector.broadcast %6 : vector<1x4xf32> to vector<2x4xf32>
    %c0_6 = arith.constant 0 : index
    %c0_7 = arith.constant 0 : index
    %8 = vector.load %arg7[%c0_6, %c0_7] : memref<12x4xf32, #tpu.memory_space<vmem>>, vector<2x4xf32>
    tpu.vector_store %arg7[%c0_6, %c0_7], %7 {strides = array<i32>} : memref<12x4xf32, #tpu.memory_space<vmem>>, vector<2x4xf32>,
    %9 = vector.extract_strided_slice %1 {offsets = [7, 0], sizes = [1, 4], strides = [1, 1]} : vector<8x4xf32> to vector<1x4xf32>
    %10 = vector.shape_cast %9 : vector<1x4xf32> to vector<1x4xf32>
    %11 = vector.broadcast %10 : vector<1x4xf32> to vector<2x4xf32>
    %c10 = arith.constant 10 : index
    %c0_8 = arith.constant 0 : index
    %12 = vector.load %arg7[%c10, %c0_8] : memref<12x4xf32, #tpu.memory_space<vmem>>, vector<2x4xf32>
    tpu.vector_store %arg7[%c10, %c0_8], %11 {strides = array<i32>} : memref<12x4xf32, #tpu.memory_space<vmem>>, vector<2x4xf32>,
    %c0_9 = arith.constant 0 : index
    %c0_10 = arith.constant 0 : index
    %13 = vector.load %arg5[%c0_9, %c0_10] : memref<2x12xf32, #tpu.memory_space<vmem>>, vector<1x8xf32>
    %14 = vector.shape_cast %13 : vector<1x8xf32> to vector<8xf32>
    %c0_11 = arith.constant 0 : index
    %c8 = arith.constant 8 : index
    %15 = vector.load %arg5[%c0_11, %c8] : memref<2x12xf32, #tpu.memory_space<vmem>>, vector<1x4xf32>
    %16 = vector.shape_cast %15 : vector<1x4xf32> to vector<4xf32>
    %cst = arith.constant 0.000000e+00 : f32
    %17 = vector.broadcast %cst : f32 to vector<10x8xf32>
    %18 = vector.shape_cast %14 : vector<8xf32> to vector<1x8xf32>
    %19 = vector.broadcast %18 : vector<1x8xf32> to vector<10x8xf32>
    %20 = arith.addf %17, %19 : vector<10x8xf32>
    %c0_12 = arith.constant 0 : index
    %c0_13 = arith.constant 0 : index
    %21 = vector.load %arg7[%c0_12, %c0_13] : memref<12x4xf32, #tpu.memory_space<vmem>>, vector<10x4xf32>
    %22 = vector.extract_strided_slice %21 {offsets = [0, 0], sizes = [10, 1], strides = [1, 1]} : vector<10x4xf32> to vector<10x1xf32>
    %c0_14 = arith.constant 0 : index
    %c0_15 = arith.constant 0 : index
    %23 = vector.load %arg3[%c0_14, %c0_15] : memref<24x8xf32, #tpu.memory_space<vmem>>, vector<1x8xf32>
    %24 = vector.shape_cast %23 : vector<1x8xf32> to vector<8xf32>
    %25 = vector.shape_cast %24 : vector<8xf32> to vector<1x8xf32>
    %26 = vector.broadcast %22 : vector<10x1xf32> to vector<10x8xf32>
    %27 = vector.broadcast %25 : vector<1x8xf32> to vector<10x8xf32>
    %28 = arith.mulf %26, %27 : vector<10x8xf32>
    %29 = arith.addf %20, %28 : vector<10x8xf32>
    %30 = vector.extract_strided_slice %21 {offsets = [0, 1], sizes = [10, 1], strides = [1, 1]} : vector<10x4xf32> to vector<10x1xf32>
    %c1 = arith.constant 1 : index
    %c0_16 = arith.constant 0 : index
    %31 = vector.load %arg3[%c1, %c0_16] : memref<24x8xf32, #tpu.memory_space<vmem>>, vector<1x8xf32>
    %32 = vector.shape_cast %31 : vector<1x8xf32> to vector<8xf32>
    %33 = vector.shape_cast %32 : vector<8xf32> to vector<1x8xf32>
    %34 = vector.broadcast %30 : vector<10x1xf32> to vector<10x8xf32>
    %35 = vector.broadcast %33 : vector<1x8xf32> to vector<10x8xf32>
    %36 = arith.mulf %34, %35 : vector<10x8xf32>
    %37 = arith.addf %29, %36 : vector<10x8xf32>
    %38 = vector.extract_strided_slice %21 {offsets = [0, 2], sizes = [10, 1], strides = [1, 1]} : vector<10x4xf32> to vector<10x1xf32>
    %c2_17 = arith.constant 2 : index
    %c0_18 = arith.constant 0 : index
    %39 = vector.load %arg3[%c2_17, %c0_18] : memref<24x8xf32, #tpu.memory_space<vmem>>, vector<1x8xf32>
    %40 = vector.shape_cast %39 : vector<1x8xf32> to vector<8xf32>
    %41 = vector.shape_cast %40 : vector<8xf32> to vector<1x8xf32>
    %42 = vector.broadcast %38 : vector<10x1xf32> to vector<10x8xf32>
    %43 = vector.broadcast %41 : vector<1x8xf32> to vector<10x8xf32>
    %44 = arith.mulf %42, %43 : vector<10x8xf32>
    %45 = arith.addf %37, %44 : vector<10x8xf32>
    %46 = vector.extract_strided_slice %21 {offsets = [0, 3], sizes = [10, 1], strides = [1, 1]} : vector<10x4xf32> to vector<10x1xf32>
    %c3 = arith.constant 3 : index
    %c0_19 = arith.constant 0 : index
    %47 = vector.load %arg3[%c3, %c0_19] : memref<24x8xf32, #tpu.memory_space<vmem>>, vector<1x8xf32>
    %48 = vector.shape_cast %47 : vector<1x8xf32> to vector<8xf32>
    %49 = vector.shape_cast %48 : vector<8xf32> to vector<1x8xf32>
    %50 = vector.broadcast %46 : vector<10x1xf32> to vector<10x8xf32>
    %51 = vector.broadcast %49 : vector<1x8xf32> to vector<10x8xf32>
    %52 = arith.mulf %50, %51 : vector<10x8xf32>
    %53 = arith.addf %45, %52 : vector<10x8xf32>
    %c1_20 = arith.constant 1 : index
    %c0_21 = arith.constant 0 : index
    %54 = vector.load %arg7[%c1_20, %c0_21] : memref<12x4xf32, #tpu.memory_space<vmem>>, vector<10x4xf32>
    %55 = vector.extract_strided_slice %54 {offsets = [0, 0], sizes = [10, 1], strides = [1, 1]} : vector<10x4xf32> to vector<10x1xf32>
    %c4 = arith.constant 4 : index
    %c0_22 = arith.constant 0 : index
    %56 = vector.load %arg3[%c4, %c0_22] : memref<24x8xf32, #tpu.memory_space<vmem>>, vector<1x8xf32>
    %57 = vector.shape_cast %56 : vector<1x8xf32> to vector<8xf32>
    %58 = vector.shape_cast %57 : vector<8xf32> to vector<1x8xf32>
    %59 = vector.broadcast %55 : vector<10x1xf32> to vector<10x8xf32>
    %60 = vector.broadcast %58 : vector<1x8xf32> to vector<10x8xf32>
    %61 = arith.mulf %59, %60 : vector<10x8xf32>
    %62 = arith.addf %53, %61 : vector<10x8xf32>
    %63 = vector.extract_strided_slice %54 {offsets = [0, 1], sizes = [10, 1], strides = [1, 1]} : vector<10x4xf32> to vector<10x1xf32>
    %c5 = arith.constant 5 : index
    %c0_23 = arith.constant 0 : index
    %64 = vector.load %arg3[%c5, %c0_23] : memref<24x8xf32, #tpu.memory_space<vmem>>, vector<1x8xf32>
    %65 = vector.shape_cast %64 : vector<1x8xf32> to vector<8xf32>
    %66 = vector.shape_cast %65 : vector<8xf32> to vector<1x8xf32>
    %67 = vector.broadcast %63 : vector<10x1xf32> to vector<10x8xf32>
    %68 = vector.broadcast %66 : vector<1x8xf32> to vector<10x8xf32>
    %69 = arith.mulf %67, %68 : vector<10x8xf32>
    %70 = arith.addf %62, %69 : vector<10x8xf32>
    %71 = vector.extract_strided_slice %54 {offsets = [0, 2], sizes = [10, 1], strides = [1, 1]} : vector<10x4xf32> to vector<10x1xf32>
    %c6 = arith.constant 6 : index
    %c0_24 = arith.constant 0 : index
    %72 = vector.load %arg3[%c6, %c0_24] : memref<24x8xf32, #tpu.memory_space<vmem>>, vector<1x8xf32>
    %73 = vector.shape_cast %72 : vector<1x8xf32> to vector<8xf32>
    %74 = vector.shape_cast %73 : vector<8xf32> to vector<1x8xf32>
    %75 = vector.broadcast %71 : vector<10x1xf32> to vector<10x8xf32>
    %76 = vector.broadcast %74 : vector<1x8xf32> to vector<10x8xf32>
    %77 = arith.mulf %75, %76 : vector<10x8xf32>
    %78 = arith.addf %70, %77 : vector<10x8xf32>
    %79 = vector.extract_strided_slice %54 {offsets = [0, 3], sizes = [10, 1], strides = [1, 1]} : vector<10x4xf32> to vector<10x1xf32>
    %c7 = arith.constant 7 : index
    %c0_25 = arith.constant 0 : index
    %80 = vector.load %arg3[%c7, %c0_25] : memref<24x8xf32, #tpu.memory_space<vmem>>, vector<1x8xf32>
    %81 = vector.shape_cast %80 : vector<1x8xf32> to vector<8xf32>
    %82 = vector.shape_cast %81 : vector<8xf32> to vector<1x8xf32>
    %83 = vector.broadcast %79 : vector<10x1xf32> to vector<10x8xf32>
    %84 = vector.broadcast %82 : vector<1x8xf32> to vector<10x8xf32>
    %85 = arith.mulf %83, %84 : vector<10x8xf32>
    %86 = arith.addf %78, %85 : vector<10x8xf32>
    %c2_26 = arith.constant 2 : index
    %c0_27 = arith.constant 0 : index
    %87 = vector.load %arg7[%c2_26, %c0_27] : memref<12x4xf32, #tpu.memory_space<vmem>>, vector<10x4xf32>
    %88 = vector.extract_strided_slice %87 {offsets = [0, 0], sizes = [10, 1], strides = [1, 1]} : vector<10x4xf32> to vector<10x1xf32>
    %c8_28 = arith.constant 8 : index
    %c0_29 = arith.constant 0 : index
    %89 = vector.load %arg3[%c8_28, %c0_29] : memref<24x8xf32, #tpu.memory_space<vmem>>, vector<1x8xf32>
    %90 = vector.shape_cast %89 : vector<1x8xf32> to vector<8xf32>
    %91 = vector.shape_cast %90 : vector<8xf32> to vector<1x8xf32>
    %92 = vector.broadcast %88 : vector<10x1xf32> to vector<10x8xf32>
    %93 = vector.broadcast %91 : vector<1x8xf32> to vector<10x8xf32>
    %94 = arith.mulf %92, %93 : vector<10x8xf32>
    %95 = arith.addf %86, %94 : vector<10x8xf32>
    %96 = vector.extract_strided_slice %87 {offsets = [0, 1], sizes = [10, 1], strides = [1, 1]} : vector<10x4xf32> to vector<10x1xf32>
    %c9 = arith.constant 9 : index
    %c0_30 = arith.constant 0 : index
    %97 = vector.load %arg3[%c9, %c0_30] : memref<24x8xf32, #tpu.memory_space<vmem>>, vector<1x8xf32>
    %98 = vector.shape_cast %97 : vector<1x8xf32> to vector<8xf32>
    %99 = vector.shape_cast %98 : vector<8xf32> to vector<1x8xf32>
    %100 = vector.broadcast %96 : vector<10x1xf32> to vector<10x8xf32>
    %101 = vector.broadcast %99 : vector<1x8xf32> to vector<10x8xf32>
    %102 = arith.mulf %100, %101 : vector<10x8xf32>
    %103 = arith.addf %95, %102 : vector<10x8xf32>
    %104 = vector.extract_strided_slice %87 {offsets = [0, 2], sizes = [10, 1], strides = [1, 1]} : vector<10x4xf32> to vector<10x1xf32>
    %c10_31 = arith.constant 10 : index
    %c0_32 = arith.constant 0 : index
    %105 = vector.load %arg3[%c10_31, %c0_32] : memref<24x8xf32, #tpu.memory_space<vmem>>, vector<1x8xf32>
    %106 = vector.shape_cast %105 : vector<1x8xf32> to vector<8xf32>
    %107 = vector.shape_cast %106 : vector<8xf32> to vector<1x8xf32>
    %108 = vector.broadcast %104 : vector<10x1xf32> to vector<10x8xf32>
    %109 = vector.broadcast %107 : vector<1x8xf32> to vector<10x8xf32>
    %110 = arith.mulf %108, %109 : vector<10x8xf32>
    %111 = arith.addf %103, %110 : vector<10x8xf32>
    %112 = vector.extract_strided_slice %87 {offsets = [0, 3], sizes = [10, 1], strides = [1, 1]} : vector<10x4xf32> to vector<10x1xf32>
    %c11 = arith.constant 11 : index
    %c0_33 = arith.constant 0 : index
    %113 = vector.load %arg3[%c11, %c0_33] : memref<24x8xf32, #tpu.memory_space<vmem>>, vector<1x8xf32>
    %114 = vector.shape_cast %113 : vector<1x8xf32> to vector<8xf32>
    %115 = vector.shape_cast %114 : vector<8xf32> to vector<1x8xf32>
    %116 = vector.broadcast %112 : vector<10x1xf32> to vector<10x8xf32>
    %117 = vector.broadcast %115 : vector<1x8xf32> to vector<10x8xf32>
    %118 = arith.mulf %116, %117 : vector<10x8xf32>
    %119 = arith.addf %111, %118 : vector<10x8xf32>
    %cst_34 = arith.constant 0.000000e+00 : f32
    %120 = vector.broadcast %cst_34 : f32 to vector<10x8xf32>
    %121 = arith.cmpf ogt, %119, %120 : vector<10x8xf32>
    %cst_35 = arith.constant 0.00999999977 : f32
    %122 = vector.broadcast %cst_35 : f32 to vector<10x8xf32>
    %123 = arith.mulf %122, %119 : vector<10x8xf32>
    %124 = arith.select %121, %119, %123 : vector<10x8xi1>, vector<10x8xf32>
    %cst_36 = arith.constant 0.000000e+00 : f32
    %125 = vector.broadcast %cst_36 : f32 to vector<8x4xf32>
    %126 = vector.shape_cast %16 : vector<4xf32> to vector<1x4xf32>
    %127 = vector.broadcast %126 : vector<1x4xf32> to vector<8x4xf32>
    %128 = arith.addf %125, %127 : vector<8x4xf32>
    %129 = vector.extract_strided_slice %124 {offsets = [0, 0], sizes = [8, 8], strides = [1, 1]} : vector<10x8xf32> to vector<8x8xf32>
    %130 = vector.extract_strided_slice %129 {offsets = [0, 0], sizes = [8, 1], strides = [1, 1]} : vector<8x8xf32> to vector<8x1xf32>
    %c0_37 = arith.constant 0 : index
    %c0_38 = arith.constant 0 : index
    %131 = vector.load %arg4[%c0_37, %c0_38] : memref<48x4xf32, #tpu.memory_space<vmem>>, vector<1x4xf32>
    %132 = vector.shape_cast %131 : vector<1x4xf32> to vector<4xf32>
    %133 = vector.shape_cast %132 : vector<4xf32> to vector<1x4xf32>
    %134 = vector.broadcast %130 : vector<8x1xf32> to vector<8x4xf32>
    %135 = vector.broadcast %133 : vector<1x4xf32> to vector<8x4xf32>
    %136 = arith.mulf %134, %135 : vector<8x4xf32>
    %137 = arith.addf %128, %136 : vector<8x4xf32>
    %138 = vector.extract_strided_slice %129 {offsets = [0, 1], sizes = [8, 1], strides = [1, 1]} : vector<8x8xf32> to vector<8x1xf32>
    %c1_39 = arith.constant 1 : index
    %c0_40 = arith.constant 0 : index
    %139 = vector.load %arg4[%c1_39, %c0_40] : memref<48x4xf32, #tpu.memory_space<vmem>>, vector<1x4xf32>
    %140 = vector.shape_cast %139 : vector<1x4xf32> to vector<4xf32>
    %141 = vector.shape_cast %140 : vector<4xf32> to vector<1x4xf32>
    %142 = vector.broadcast %138 : vector<8x1xf32> to vector<8x4xf32>
    %143 = vector.broadcast %141 : vector<1x4xf32> to vector<8x4xf32>
    %144 = arith.mulf %142, %143 : vector<8x4xf32>
    %145 = arith.addf %137, %144 : vector<8x4xf32>
    %146 = vector.extract_strided_slice %129 {offsets = [0, 2], sizes = [8, 1], strides = [1, 1]} : vector<8x8xf32> to vector<8x1xf32>
    %c2_41 = arith.constant 2 : index
    %c0_42 = arith.constant 0 : index
    %147 = vector.load %arg4[%c2_41, %c0_42] : memref<48x4xf32, #tpu.memory_space<vmem>>, vector<1x4xf32>
    %148 = vector.shape_cast %147 : vector<1x4xf32> to vector<4xf32>
    %149 = vector.shape_cast %148 : vector<4xf32> to vector<1x4xf32>
    %150 = vector.broadcast %146 : vector<8x1xf32> to vector<8x4xf32>
    %151 = vector.broadcast %149 : vector<1x4xf32> to vector<8x4xf32>
    %152 = arith.mulf %150, %151 : vector<8x4xf32>
    %153 = arith.addf %145, %152 : vector<8x4xf32>
    %154 = vector.extract_strided_slice %129 {offsets = [0, 3], sizes = [8, 1], strides = [1, 1]} : vector<8x8xf32> to vector<8x1xf32>
    %c3_43 = arith.constant 3 : index
    %c0_44 = arith.constant 0 : index
    %155 = vector.load %arg4[%c3_43, %c0_44] : memref<48x4xf32, #tpu.memory_space<vmem>>, vector<1x4xf32>
    %156 = vector.shape_cast %155 : vector<1x4xf32> to vector<4xf32>
    %157 = vector.shape_cast %156 : vector<4xf32> to vector<1x4xf32>
    %158 = vector.broadcast %154 : vector<8x1xf32> to vector<8x4xf32>
    %159 = vector.broadcast %157 : vector<1x4xf32> to vector<8x4xf32>
    %160 = arith.mulf %158, %159 : vector<8x4xf32>
    %161 = arith.addf %153, %160 : vector<8x4xf32>
    %162 = vector.extract_strided_slice %129 {offsets = [0, 4], sizes = [8, 1], strides = [1, 1]} : vector<8x8xf32> to vector<8x1xf32>
    %c4_45 = arith.constant 4 : index
    %c0_46 = arith.constant 0 : index
    %163 = vector.load %arg4[%c4_45, %c0_46] : memref<48x4xf32, #tpu.memory_space<vmem>>, vector<1x4xf32>
    %164 = vector.shape_cast %163 : vector<1x4xf32> to vector<4xf32>
    %165 = vector.shape_cast %164 : vector<4xf32> to vector<1x4xf32>
    %166 = vector.broadcast %162 : vector<8x1xf32> to vector<8x4xf32>
    %167 = vector.broadcast %165 : vector<1x4xf32> to vector<8x4xf32>
    %168 = arith.mulf %166, %167 : vector<8x4xf32>
    %169 = arith.addf %161, %168 : vector<8x4xf32>
    %170 = vector.extract_strided_slice %129 {offsets = [0, 5], sizes = [8, 1], strides = [1, 1]} : vector<8x8xf32> to vector<8x1xf32>
    %c5_47 = arith.constant 5 : index
    %c0_48 = arith.constant 0 : index
    %171 = vector.load %arg4[%c5_47, %c0_48] : memref<48x4xf32, #tpu.memory_space<vmem>>, vector<1x4xf32>
    %172 = vector.shape_cast %171 : vector<1x4xf32> to vector<4xf32>
    %173 = vector.shape_cast %172 : vector<4xf32> to vector<1x4xf32>
    %174 = vector.broadcast %170 : vector<8x1xf32> to vector<8x4xf32>
    %175 = vector.broadcast %173 : vector<1x4xf32> to vector<8x4xf32>
    %176 = arith.mulf %174, %175 : vector<8x4xf32>
    %177 = arith.addf %169, %176 : vector<8x4xf32>
    %178 = vector.extract_strided_slice %129 {offsets = [0, 6], sizes = [8, 1], strides = [1, 1]} : vector<8x8xf32> to vector<8x1xf32>
    %c6_49 = arith.constant 6 : index
    %c0_50 = arith.constant 0 : index
    %179 = vector.load %arg4[%c6_49, %c0_50] : memref<48x4xf32, #tpu.memory_space<vmem>>, vector<1x4xf32>
    %180 = vector.shape_cast %179 : vector<1x4xf32> to vector<4xf32>
    %181 = vector.shape_cast %180 : vector<4xf32> to vector<1x4xf32>
    %182 = vector.broadcast %178 : vector<8x1xf32> to vector<8x4xf32>
    %183 = vector.broadcast %181 : vector<1x4xf32> to vector<8x4xf32>
    %184 = arith.mulf %182, %183 : vector<8x4xf32>
    %185 = arith.addf %177, %184 : vector<8x4xf32>
    %186 = vector.extract_strided_slice %129 {offsets = [0, 7], sizes = [8, 1], strides = [1, 1]} : vector<8x8xf32> to vector<8x1xf32>
    %c7_51 = arith.constant 7 : index
    %c0_52 = arith.constant 0 : index
    %187 = vector.load %arg4[%c7_51, %c0_52] : memref<48x4xf32, #tpu.memory_space<vmem>>, vector<1x4xf32>
    %188 = vector.shape_cast %187 : vector<1x4xf32> to vector<4xf32>
    %189 = vector.shape_cast %188 : vector<4xf32> to vector<1x4xf32>
    %190 = vector.broadcast %186 : vector<8x1xf32> to vector<8x4xf32>
    %191 = vector.broadcast %189 : vector<1x4xf32> to vector<8x4xf32>
    %192 = arith.mulf %190, %191 : vector<8x4xf32>
    %193 = arith.addf %185, %192 : vector<8x4xf32>
    %194 = vector.extract_strided_slice %124 {offsets = [1, 0], sizes = [8, 8], strides = [1, 1]} : vector<10x8xf32> to vector<8x8xf32>
    %195 = vector.extract_strided_slice %194 {offsets = [0, 0], sizes = [8, 1], strides = [1, 1]} : vector<8x8xf32> to vector<8x1xf32>
    %c8_53 = arith.constant 8 : index
    %c0_54 = arith.constant 0 : index
    %196 = vector.load %arg4[%c8_53, %c0_54] : memref<48x4xf32, #tpu.memory_space<vmem>>, vector<1x4xf32>
    %197 = vector.shape_cast %196 : vector<1x4xf32> to vector<4xf32>
    %198 = vector.shape_cast %197 : vector<4xf32> to vector<1x4xf32>
    %199 = vector.broadcast %195 : vector<8x1xf32> to vector<8x4xf32>
    %200 = vector.broadcast %198 : vector<1x4xf32> to vector<8x4xf32>
    %201 = arith.mulf %199, %200 : vector<8x4xf32>
    %202 = arith.addf %193, %201 : vector<8x4xf32>
    %203 = vector.extract_strided_slice %194 {offsets = [0, 1], sizes = [8, 1], strides = [1, 1]} : vector<8x8xf32> to vector<8x1xf32>
    %c9_55 = arith.constant 9 : index
    %c0_56 = arith.constant 0 : index
    %204 = vector.load %arg4[%c9_55, %c0_56] : memref<48x4xf32, #tpu.memory_space<vmem>>, vector<1x4xf32>
    %205 = vector.shape_cast %204 : vector<1x4xf32> to vector<4xf32>
    %206 = vector.shape_cast %205 : vector<4xf32> to vector<1x4xf32>
    %207 = vector.broadcast %203 : vector<8x1xf32> to vector<8x4xf32>
    %208 = vector.broadcast %206 : vector<1x4xf32> to vector<8x4xf32>
    %209 = arith.mulf %207, %208 : vector<8x4xf32>
    %210 = arith.addf %202, %209 : vector<8x4xf32>
    %211 = vector.extract_strided_slice %194 {offsets = [0, 2], sizes = [8, 1], strides = [1, 1]} : vector<8x8xf32> to vector<8x1xf32>
    %c10_57 = arith.constant 10 : index
    %c0_58 = arith.constant 0 : index
    %212 = vector.load %arg4[%c10_57, %c0_58] : memref<48x4xf32, #tpu.memory_space<vmem>>, vector<1x4xf32>
    %213 = vector.shape_cast %212 : vector<1x4xf32> to vector<4xf32>
    %214 = vector.shape_cast %213 : vector<4xf32> to vector<1x4xf32>
    %215 = vector.broadcast %211 : vector<8x1xf32> to vector<8x4xf32>
    %216 = vector.broadcast %214 : vector<1x4xf32> to vector<8x4xf32>
    %217 = arith.mulf %215, %216 : vector<8x4xf32>
    %218 = arith.addf %210, %217 : vector<8x4xf32>
    %219 = vector.extract_strided_slice %194 {offsets = [0, 3], sizes = [8, 1], strides = [1, 1]} : vector<8x8xf32> to vector<8x1xf32>
    %c11_59 = arith.constant 11 : index
    %c0_60 = arith.constant 0 : index
    %220 = vector.load %arg4[%c11_59, %c0_60] : memref<48x4xf32, #tpu.memory_space<vmem>>, vector<1x4xf32>
    %221 = vector.shape_cast %220 : vector<1x4xf32> to vector<4xf32>
    %222 = vector.shape_cast %221 : vector<4xf32> to vector<1x4xf32>
    %223 = vector.broadcast %219 : vector<8x1xf32> to vector<8x4xf32>
    %224 = vector.broadcast %222 : vector<1x4xf32> to vector<8x4xf32>
    %225 = arith.mulf %223, %224 : vector<8x4xf32>
    %226 = arith.addf %218, %225 : vector<8x4xf32>
    %227 = vector.extract_strided_slice %194 {offsets = [0, 4], sizes = [8, 1], strides = [1, 1]} : vector<8x8xf32> to vector<8x1xf32>
    %c12 = arith.constant 12 : index
    %c0_61 = arith.constant 0 : index
    %228 = vector.load %arg4[%c12, %c0_61] : memref<48x4xf32, #tpu.memory_space<vmem>>, vector<1x4xf32>
    %229 = vector.shape_cast %228 : vector<1x4xf32> to vector<4xf32>
    %230 = vector.shape_cast %229 : vector<4xf32> to vector<1x4xf32>
    %231 = vector.broadcast %227 : vector<8x1xf32> to vector<8x4xf32>
    %232 = vector.broadcast %230 : vector<1x4xf32> to vector<8x4xf32>
    %233 = arith.mulf %231, %232 : vector<8x4xf32>
    %234 = arith.addf %226, %233 : vector<8x4xf32>
    %235 = vector.extract_strided_slice %194 {offsets = [0, 5], sizes = [8, 1], strides = [1, 1]} : vector<8x8xf32> to vector<8x1xf32>
    %c13 = arith.constant 13 : index
    %c0_62 = arith.constant 0 : index
    %236 = vector.load %arg4[%c13, %c0_62] : memref<48x4xf32, #tpu.memory_space<vmem>>, vector<1x4xf32>
    %237 = vector.shape_cast %236 : vector<1x4xf32> to vector<4xf32>
    %238 = vector.shape_cast %237 : vector<4xf32> to vector<1x4xf32>
    %239 = vector.broadcast %235 : vector<8x1xf32> to vector<8x4xf32>
    %240 = vector.broadcast %238 : vector<1x4xf32> to vector<8x4xf32>
    %241 = arith.mulf %239, %240 : vector<8x4xf32>
    %242 = arith.addf %234, %241 : vector<8x4xf32>
    %243 = vector.extract_strided_slice %194 {offsets = [0, 6], sizes = [8, 1], strides = [1, 1]} : vector<8x8xf32> to vector<8x1xf32>
    %c14 = arith.constant 14 : index
    %c0_63 = arith.constant 0 : index
    %244 = vector.load %arg4[%c14, %c0_63] : memref<48x4xf32, #tpu.memory_space<vmem>>, vector<1x4xf32>
    %245 = vector.shape_cast %244 : vector<1x4xf32> to vector<4xf32>
    %246 = vector.shape_cast %245 : vector<4xf32> to vector<1x4xf32>
    %247 = vector.broadcast %243 : vector<8x1xf32> to vector<8x4xf32>
    %248 = vector.broadcast %246 : vector<1x4xf32> to vector<8x4xf32>
    %249 = arith.mulf %247, %248 : vector<8x4xf32>
    %250 = arith.addf %242, %249 : vector<8x4xf32>
    %251 = vector.extract_strided_slice %194 {offsets = [0, 7], sizes = [8, 1], strides = [1, 1]} : vector<8x8xf32> to vector<8x1xf32>
    %c15 = arith.constant 15 : index
    %c0_64 = arith.constant 0 : index
    %252 = vector.load %arg4[%c15, %c0_64] : memref<48x4xf32, #tpu.memory_space<vmem>>, vector<1x4xf32>
    %253 = vector.shape_cast %252 : vector<1x4xf32> to vector<4xf32>
    %254 = vector.shape_cast %253 : vector<4xf32> to vector<1x4xf32>
    %255 = vector.broadcast %251 : vector<8x1xf32> to vector<8x4xf32>
    %256 = vector.broadcast %254 : vector<1x4xf32> to vector<8x4xf32>
    %257 = arith.mulf %255, %256 : vector<8x4xf32>
    %258 = arith.addf %250, %257 : vector<8x4xf32>
    %259 = vector.extract_strided_slice %124 {offsets = [2, 0], sizes = [8, 8], strides = [1, 1]} : vector<10x8xf32> to vector<8x8xf32>
    %260 = vector.extract_strided_slice %259 {offsets = [0, 0], sizes = [8, 1], strides = [1, 1]} : vector<8x8xf32> to vector<8x1xf32>
    %c16 = arith.constant 16 : index
    %c0_65 = arith.constant 0 : index
    %261 = vector.load %arg4[%c16, %c0_65] : memref<48x4xf32, #tpu.memory_space<vmem>>, vector<1x4xf32>
    %262 = vector.shape_cast %261 : vector<1x4xf32> to vector<4xf32>
    %263 = vector.shape_cast %262 : vector<4xf32> to vector<1x4xf32>
    %264 = vector.broadcast %260 : vector<8x1xf32> to vector<8x4xf32>
    %265 = vector.broadcast %263 : vector<1x4xf32> to vector<8x4xf32>
    %266 = arith.mulf %264, %265 : vector<8x4xf32>
    %267 = arith.addf %258, %266 : vector<8x4xf32>
    %268 = vector.extract_strided_slice %259 {offsets = [0, 1], sizes = [8, 1], strides = [1, 1]} : vector<8x8xf32> to vector<8x1xf32>
    %c17 = arith.constant 17 : index
    %c0_66 = arith.constant 0 : index
    %269 = vector.load %arg4[%c17, %c0_66] : memref<48x4xf32, #tpu.memory_space<vmem>>, vector<1x4xf32>
    %270 = vector.shape_cast %269 : vector<1x4xf32> to vector<4xf32>
    %271 = vector.shape_cast %270 : vector<4xf32> to vector<1x4xf32>
    %272 = vector.broadcast %268 : vector<8x1xf32> to vector<8x4xf32>
    %273 = vector.broadcast %271 : vector<1x4xf32> to vector<8x4xf32>
    %274 = arith.mulf %272, %273 : vector<8x4xf32>
    %275 = arith.addf %267, %274 : vector<8x4xf32>
    %276 = vector.extract_strided_slice %259 {offsets = [0, 2], sizes = [8, 1], strides = [1, 1]} : vector<8x8xf32> to vector<8x1xf32>
    %c18 = arith.constant 18 : index
    %c0_67 = arith.constant 0 : index
    %277 = vector.load %arg4[%c18, %c0_67] : memref<48x4xf32, #tpu.memory_space<vmem>>, vector<1x4xf32>
    %278 = vector.shape_cast %277 : vector<1x4xf32> to vector<4xf32>
    %279 = vector.shape_cast %278 : vector<4xf32> to vector<1x4xf32>
    %280 = vector.broadcast %276 : vector<8x1xf32> to vector<8x4xf32>
    %281 = vector.broadcast %279 : vector<1x4xf32> to vector<8x4xf32>
    %282 = arith.mulf %280, %281 : vector<8x4xf32>
    %283 = arith.addf %275, %282 : vector<8x4xf32>
    %284 = vector.extract_strided_slice %259 {offsets = [0, 3], sizes = [8, 1], strides = [1, 1]} : vector<8x8xf32> to vector<8x1xf32>
    %c19 = arith.constant 19 : index
    %c0_68 = arith.constant 0 : index
    %285 = vector.load %arg4[%c19, %c0_68] : memref<48x4xf32, #tpu.memory_space<vmem>>, vector<1x4xf32>
    %286 = vector.shape_cast %285 : vector<1x4xf32> to vector<4xf32>
    %287 = vector.shape_cast %286 : vector<4xf32> to vector<1x4xf32>
    %288 = vector.broadcast %284 : vector<8x1xf32> to vector<8x4xf32>
    %289 = vector.broadcast %287 : vector<1x4xf32> to vector<8x4xf32>
    %290 = arith.mulf %288, %289 : vector<8x4xf32>
    %291 = arith.addf %283, %290 : vector<8x4xf32>
    %292 = vector.extract_strided_slice %259 {offsets = [0, 4], sizes = [8, 1], strides = [1, 1]} : vector<8x8xf32> to vector<8x1xf32>
    %c20 = arith.constant 20 : index
    %c0_69 = arith.constant 0 : index
    %293 = vector.load %arg4[%c20, %c0_69] : memref<48x4xf32, #tpu.memory_space<vmem>>, vector<1x4xf32>
    %294 = vector.shape_cast %293 : vector<1x4xf32> to vector<4xf32>
    %295 = vector.shape_cast %294 : vector<4xf32> to vector<1x4xf32>
    %296 = vector.broadcast %292 : vector<8x1xf32> to vector<8x4xf32>
    %297 = vector.broadcast %295 : vector<1x4xf32> to vector<8x4xf32>
    %298 = arith.mulf %296, %297 : vector<8x4xf32>
    %299 = arith.addf %291, %298 : vector<8x4xf32>
    %300 = vector.extract_strided_slice %259 {offsets = [0, 5], sizes = [8, 1], strides = [1, 1]} : vector<8x8xf32> to vector<8x1xf32>
    %c21 = arith.constant 21 : index
    %c0_70 = arith.constant 0 : index
    %301 = vector.load %arg4[%c21, %c0_70] : memref<48x4xf32, #tpu.memory_space<vmem>>, vector<1x4xf32>
    %302 = vector.shape_cast %301 : vector<1x4xf32> to vector<4xf32>
    %303 = vector.shape_cast %302 : vector<4xf32> to vector<1x4xf32>
    %304 = vector.broadcast %300 : vector<8x1xf32> to vector<8x4xf32>
    %305 = vector.broadcast %303 : vector<1x4xf32> to vector<8x4xf32>
    %306 = arith.mulf %304, %305 : vector<8x4xf32>
    %307 = arith.addf %299, %306 : vector<8x4xf32>
    %308 = vector.extract_strided_slice %259 {offsets = [0, 6], sizes = [8, 1], strides = [1, 1]} : vector<8x8xf32> to vector<8x1xf32>
    %c22 = arith.constant 22 : index
    %c0_71 = arith.constant 0 : index
    %309 = vector.load %arg4[%c22, %c0_71] : memref<48x4xf32, #tpu.memory_space<vmem>>, vector<1x4xf32>
    %310 = vector.shape_cast %309 : vector<1x4xf32> to vector<4xf32>
    %311 = vector.shape_cast %310 : vector<4xf32> to vector<1x4xf32>
    %312 = vector.broadcast %308 : vector<8x1xf32> to vector<8x4xf32>
    %313 = vector.broadcast %311 : vector<1x4xf32> to vector<8x4xf32>
    %314 = arith.mulf %312, %313 : vector<8x4xf32>
    %315 = arith.addf %307, %314 : vector<8x4xf32>
    %316 = vector.extract_strided_slice %259 {offsets = [0, 7], sizes = [8, 1], strides = [1, 1]} : vector<8x8xf32> to vector<8x1xf32>
    %c23 = arith.constant 23 : index
    %c0_72 = arith.constant 0 : index
    %317 = vector.load %arg4[%c23, %c0_72] : memref<48x4xf32, #tpu.memory_space<vmem>>, vector<1x4xf32>
    %318 = vector.shape_cast %317 : vector<1x4xf32> to vector<4xf32>
    %319 = vector.shape_cast %318 : vector<4xf32> to vector<1x4xf32>
    %320 = vector.broadcast %316 : vector<8x1xf32> to vector<8x4xf32>
    %321 = vector.broadcast %319 : vector<1x4xf32> to vector<8x4xf32>
    %322 = arith.mulf %320, %321 : vector<8x4xf32>
    %323 = arith.addf %315, %322 : vector<8x4xf32>
    %324 = math.tanh %323 : vector<8x4xf32>
    %325 = arith.subf %3, %324 : vector<8x4xf32>
    %c2_73 = arith.constant 2 : index
    %c0_74 = arith.constant 0 : index
    %326 = vector.load %arg7[%c2_73, %c0_74] : memref<12x4xf32, #tpu.memory_space<vmem>>, vector<8x4xf32>
    tpu.vector_store %arg7[%c2_73, %c0_74], %325 {strides = array<i32>} : memref<12x4xf32, #tpu.memory_space<vmem>>, vector<8x4xf32>,
    %327 = vector.extract_strided_slice %325 {offsets = [0, 0], sizes = [1, 4], strides = [1, 1]} : vector<8x4xf32> to vector<1x4xf32>
    %328 = vector.shape_cast %327 : vector<1x4xf32> to vector<1x4xf32>
    %329 = vector.broadcast %328 : vector<1x4xf32> to vector<2x4xf32>
    %c0_75 = arith.constant 0 : index
    %c0_76 = arith.constant 0 : index
    %330 = vector.load %arg7[%c0_75, %c0_76] : memref<12x4xf32, #tpu.memory_space<vmem>>, vector<2x4xf32>
    tpu.vector_store %arg7[%c0_75, %c0_76], %329 {strides = array<i32>} : memref<12x4xf32, #tpu.memory_space<vmem>>, vector<2x4xf32>,
    %331 = vector.extract_strided_slice %325 {offsets = [7, 0], sizes = [1, 4], strides = [1, 1]} : vector<8x4xf32> to vector<1x4xf32>
    %332 = vector.shape_cast %331 : vector<1x4xf32> to vector<1x4xf32>
    %333 = vector.broadcast %332 : vector<1x4xf32> to vector<2x4xf32>
    %c10_77 = arith.constant 10 : index
    %c0_78 = arith.constant 0 : index
    %334 = vector.load %arg7[%c10_77, %c0_78] : memref<12x4xf32, #tpu.memory_space<vmem>>, vector<2x4xf32>
    tpu.vector_store %arg7[%c10_77, %c0_78], %333 {strides = array<i32>} : memref<12x4xf32, #tpu.memory_space<vmem>>, vector<2x4xf32>,
    %c1_79 = arith.constant 1 : index
    %c0_80 = arith.constant 0 : index
    %335 = vector.load %arg5[%c1_79, %c0_80] : memref<2x12xf32, #tpu.memory_space<vmem>>, vector<1x8xf32>
    %336 = vector.shape_cast %335 : vector<1x8xf32> to vector<8xf32>
    %c1_81 = arith.constant 1 : index
    %c8_82 = arith.constant 8 : index
    %337 = vector.load %arg5[%c1_81, %c8_82] : memref<2x12xf32, #tpu.memory_space<vmem>>, vector<1x4xf32>
    %338 = vector.shape_cast %337 : vector<1x4xf32> to vector<4xf32>
    %cst_83 = arith.constant 0.000000e+00 : f32
    %339 = vector.broadcast %cst_83 : f32 to vector<10x8xf32>
    %340 = vector.shape_cast %336 : vector<8xf32> to vector<1x8xf32>
    %341 = vector.broadcast %340 : vector<1x8xf32> to vector<10x8xf32>
    %342 = arith.addf %339, %341 : vector<10x8xf32>
    %c0_84 = arith.constant 0 : index
    %c0_85 = arith.constant 0 : index
    %343 = vector.load %arg7[%c0_84, %c0_85] : memref<12x4xf32, #tpu.memory_space<vmem>>, vector<10x4xf32>
    %344 = vector.extract_strided_slice %343 {offsets = [0, 0], sizes = [10, 1], strides = [1, 1]} : vector<10x4xf32> to vector<10x1xf32>
    %c12_86 = arith.constant 12 : index
    %c0_87 = arith.constant 0 : index
    %345 = vector.load %arg3[%c12_86, %c0_87] : memref<24x8xf32, #tpu.memory_space<vmem>>, vector<1x8xf32>
    %346 = vector.shape_cast %345 : vector<1x8xf32> to vector<8xf32>
    %347 = vector.shape_cast %346 : vector<8xf32> to vector<1x8xf32>
    %348 = vector.broadcast %344 : vector<10x1xf32> to vector<10x8xf32>
    %349 = vector.broadcast %347 : vector<1x8xf32> to vector<10x8xf32>
    %350 = arith.mulf %348, %349 : vector<10x8xf32>
    %351 = arith.addf %342, %350 : vector<10x8xf32>
    %352 = vector.extract_strided_slice %343 {offsets = [0, 1], sizes = [10, 1], strides = [1, 1]} : vector<10x4xf32> to vector<10x1xf32>
    %c13_88 = arith.constant 13 : index
    %c0_89 = arith.constant 0 : index
    %353 = vector.load %arg3[%c13_88, %c0_89] : memref<24x8xf32, #tpu.memory_space<vmem>>, vector<1x8xf32>
    %354 = vector.shape_cast %353 : vector<1x8xf32> to vector<8xf32>
    %355 = vector.shape_cast %354 : vector<8xf32> to vector<1x8xf32>
    %356 = vector.broadcast %352 : vector<10x1xf32> to vector<10x8xf32>
    %357 = vector.broadcast %355 : vector<1x8xf32> to vector<10x8xf32>
    %358 = arith.mulf %356, %357 : vector<10x8xf32>
    %359 = arith.addf %351, %358 : vector<10x8xf32>
    %360 = vector.extract_strided_slice %343 {offsets = [0, 2], sizes = [10, 1], strides = [1, 1]} : vector<10x4xf32> to vector<10x1xf32>
    %c14_90 = arith.constant 14 : index
    %c0_91 = arith.constant 0 : index
    %361 = vector.load %arg3[%c14_90, %c0_91] : memref<24x8xf32, #tpu.memory_space<vmem>>, vector<1x8xf32>
    %362 = vector.shape_cast %361 : vector<1x8xf32> to vector<8xf32>
    %363 = vector.shape_cast %362 : vector<8xf32> to vector<1x8xf32>
    %364 = vector.broadcast %360 : vector<10x1xf32> to vector<10x8xf32>
    %365 = vector.broadcast %363 : vector<1x8xf32> to vector<10x8xf32>
    %366 = arith.mulf %364, %365 : vector<10x8xf32>
    %367 = arith.addf %359, %366 : vector<10x8xf32>
    %368 = vector.extract_strided_slice %343 {offsets = [0, 3], sizes = [10, 1], strides = [1, 1]} : vector<10x4xf32> to vector<10x1xf32>
    %c15_92 = arith.constant 15 : index
    %c0_93 = arith.constant 0 : index
    %369 = vector.load %arg3[%c15_92, %c0_93] : memref<24x8xf32, #tpu.memory_space<vmem>>, vector<1x8xf32>
    %370 = vector.shape_cast %369 : vector<1x8xf32> to vector<8xf32>
    %371 = vector.shape_cast %370 : vector<8xf32> to vector<1x8xf32>
    %372 = vector.broadcast %368 : vector<10x1xf32> to vector<10x8xf32>
    %373 = vector.broadcast %371 : vector<1x8xf32> to vector<10x8xf32>
    %374 = arith.mulf %372, %373 : vector<10x8xf32>
    %375 = arith.addf %367, %374 : vector<10x8xf32>
    %c1_94 = arith.constant 1 : index
    %c0_95 = arith.constant 0 : index
    %376 = vector.load %arg7[%c1_94, %c0_95] : memref<12x4xf32, #tpu.memory_space<vmem>>, vector<10x4xf32>
    %377 = vector.extract_strided_slice %376 {offsets = [0, 0], sizes = [10, 1], strides = [1, 1]} : vector<10x4xf32> to vector<10x1xf32>
    %c16_96 = arith.constant 16 : index
    %c0_97 = arith.constant 0 : index
    %378 = vector.load %arg3[%c16_96, %c0_97] : memref<24x8xf32, #tpu.memory_space<vmem>>, vector<1x8xf32>
    %379 = vector.shape_cast %378 : vector<1x8xf32> to vector<8xf32>
    %380 = vector.shape_cast %379 : vector<8xf32> to vector<1x8xf32>
    %381 = vector.broadcast %377 : vector<10x1xf32> to vector<10x8xf32>
    %382 = vector.broadcast %380 : vector<1x8xf32> to vector<10x8xf32>
    %383 = arith.mulf %381, %382 : vector<10x8xf32>
    %384 = arith.addf %375, %383 : vector<10x8xf32>
    %385 = vector.extract_strided_slice %376 {offsets = [0, 1], sizes = [10, 1], strides = [1, 1]} : vector<10x4xf32> to vector<10x1xf32>
    %c17_98 = arith.constant 17 : index
    %c0_99 = arith.constant 0 : index
    %386 = vector.load %arg3[%c17_98, %c0_99] : memref<24x8xf32, #tpu.memory_space<vmem>>, vector<1x8xf32>
    %387 = vector.shape_cast %386 : vector<1x8xf32> to vector<8xf32>
    %388 = vector.shape_cast %387 : vector<8xf32> to vector<1x8xf32>
    %389 = vector.broadcast %385 : vector<10x1xf32> to vector<10x8xf32>
    %390 = vector.broadcast %388 : vector<1x8xf32> to vector<10x8xf32>
    %391 = arith.mulf %389, %390 : vector<10x8xf32>
    %392 = arith.addf %384, %391 : vector<10x8xf32>
    %393 = vector.extract_strided_slice %376 {offsets = [0, 2], sizes = [10, 1], strides = [1, 1]} : vector<10x4xf32> to vector<10x1xf32>
    %c18_100 = arith.constant 18 : index
    %c0_101 = arith.constant 0 : index
    %394 = vector.load %arg3[%c18_100, %c0_101] : memref<24x8xf32, #tpu.memory_space<vmem>>, vector<1x8xf32>
    %395 = vector.shape_cast %394 : vector<1x8xf32> to vector<8xf32>
    %396 = vector.shape_cast %395 : vector<8xf32> to vector<1x8xf32>
    %397 = vector.broadcast %393 : vector<10x1xf32> to vector<10x8xf32>
    %398 = vector.broadcast %396 : vector<1x8xf32> to vector<10x8xf32>
    %399 = arith.mulf %397, %398 : vector<10x8xf32>
    %400 = arith.addf %392, %399 : vector<10x8xf32>
    %401 = vector.extract_strided_slice %376 {offsets = [0, 3], sizes = [10, 1], strides = [1, 1]} : vector<10x4xf32> to vector<10x1xf32>
    %c19_102 = arith.constant 19 : index
    %c0_103 = arith.constant 0 : index
    %402 = vector.load %arg3[%c19_102, %c0_103] : memref<24x8xf32, #tpu.memory_space<vmem>>, vector<1x8xf32>
    %403 = vector.shape_cast %402 : vector<1x8xf32> to vector<8xf32>
    %404 = vector.shape_cast %403 : vector<8xf32> to vector<1x8xf32>
    %405 = vector.broadcast %401 : vector<10x1xf32> to vector<10x8xf32>
    %406 = vector.broadcast %404 : vector<1x8xf32> to vector<10x8xf32>
    %407 = arith.mulf %405, %406 : vector<10x8xf32>
    %408 = arith.addf %400, %407 : vector<10x8xf32>
    %c2_104 = arith.constant 2 : index
    %c0_105 = arith.constant 0 : index
    %409 = vector.load %arg7[%c2_104, %c0_105] : memref<12x4xf32, #tpu.memory_space<vmem>>, vector<10x4xf32>
    %410 = vector.extract_strided_slice %409 {offsets = [0, 0], sizes = [10, 1], strides = [1, 1]} : vector<10x4xf32> to vector<10x1xf32>
    %c20_106 = arith.constant 20 : index
    %c0_107 = arith.constant 0 : index
    %411 = vector.load %arg3[%c20_106, %c0_107] : memref<24x8xf32, #tpu.memory_space<vmem>>, vector<1x8xf32>
    %412 = vector.shape_cast %411 : vector<1x8xf32> to vector<8xf32>
    %413 = vector.shape_cast %412 : vector<8xf32> to vector<1x8xf32>
    %414 = vector.broadcast %410 : vector<10x1xf32> to vector<10x8xf32>
    %415 = vector.broadcast %413 : vector<1x8xf32> to vector<10x8xf32>
    %416 = arith.mulf %414, %415 : vector<10x8xf32>
    %417 = arith.addf %408, %416 : vector<10x8xf32>
    %418 = vector.extract_strided_slice %409 {offsets = [0, 1], sizes = [10, 1], strides = [1, 1]} : vector<10x4xf32> to vector<10x1xf32>
    %c21_108 = arith.constant 21 : index
    %c0_109 = arith.constant 0 : index
    %419 = vector.load %arg3[%c21_108, %c0_109] : memref<24x8xf32, #tpu.memory_space<vmem>>, vector<1x8xf32>
    %420 = vector.shape_cast %419 : vector<1x8xf32> to vector<8xf32>
    %421 = vector.shape_cast %420 : vector<8xf32> to vector<1x8xf32>
    %422 = vector.broadcast %418 : vector<10x1xf32> to vector<10x8xf32>
    %423 = vector.broadcast %421 : vector<1x8xf32> to vector<10x8xf32>
    %424 = arith.mulf %422, %423 : vector<10x8xf32>
    %425 = arith.addf %417, %424 : vector<10x8xf32>
    %426 = vector.extract_strided_slice %409 {offsets = [0, 2], sizes = [10, 1], strides = [1, 1]} : vector<10x4xf32> to vector<10x1xf32>
    %c22_110 = arith.constant 22 : index
    %c0_111 = arith.constant 0 : index
    %427 = vector.load %arg3[%c22_110, %c0_111] : memref<24x8xf32, #tpu.memory_space<vmem>>, vector<1x8xf32>
    %428 = vector.shape_cast %427 : vector<1x8xf32> to vector<8xf32>
    %429 = vector.shape_cast %428 : vector<8xf32> to vector<1x8xf32>
    %430 = vector.broadcast %426 : vector<10x1xf32> to vector<10x8xf32>
    %431 = vector.broadcast %429 : vector<1x8xf32> to vector<10x8xf32>
    %432 = arith.mulf %430, %431 : vector<10x8xf32>
    %433 = arith.addf %425, %432 : vector<10x8xf32>
    %434 = vector.extract_strided_slice %409 {offsets = [0, 3], sizes = [10, 1], strides = [1, 1]} : vector<10x4xf32> to vector<10x1xf32>
    %c23_112 = arith.constant 23 : index
    %c0_113 = arith.constant 0 : index
    %435 = vector.load %arg3[%c23_112, %c0_113] : memref<24x8xf32, #tpu.memory_space<vmem>>, vector<1x8xf32>
    %436 = vector.shape_cast %435 : vector<1x8xf32> to vector<8xf32>
    %437 = vector.shape_cast %436 : vector<8xf32> to vector<1x8xf32>
    %438 = vector.broadcast %434 : vector<10x1xf32> to vector<10x8xf32>
    %439 = vector.broadcast %437 : vector<1x8xf32> to vector<10x8xf32>
    %440 = arith.mulf %438, %439 : vector<10x8xf32>
    %441 = arith.addf %433, %440 : vector<10x8xf32>
    %cst_114 = arith.constant 0.000000e+00 : f32
    %442 = vector.broadcast %cst_114 : f32 to vector<10x8xf32>
    %443 = arith.cmpf ogt, %441, %442 : vector<10x8xf32>
    %cst_115 = arith.constant 0.00999999977 : f32
    %444 = vector.broadcast %cst_115 : f32 to vector<10x8xf32>
    %445 = arith.mulf %444, %441 : vector<10x8xf32>
    %446 = arith.select %443, %441, %445 : vector<10x8xi1>, vector<10x8xf32>
    %cst_116 = arith.constant 0.000000e+00 : f32
    %447 = vector.broadcast %cst_116 : f32 to vector<8x4xf32>
    %448 = vector.shape_cast %338 : vector<4xf32> to vector<1x4xf32>
    %449 = vector.broadcast %448 : vector<1x4xf32> to vector<8x4xf32>
    %450 = arith.addf %447, %449 : vector<8x4xf32>
    %451 = vector.extract_strided_slice %446 {offsets = [0, 0], sizes = [8, 8], strides = [1, 1]} : vector<10x8xf32> to vector<8x8xf32>
    %452 = vector.extract_strided_slice %451 {offsets = [0, 0], sizes = [8, 1], strides = [1, 1]} : vector<8x8xf32> to vector<8x1xf32>
    %c24 = arith.constant 24 : index
    %c0_117 = arith.constant 0 : index
    %453 = vector.load %arg4[%c24, %c0_117] : memref<48x4xf32, #tpu.memory_space<vmem>>, vector<1x4xf32>
    %454 = vector.shape_cast %453 : vector<1x4xf32> to vector<4xf32>
    %455 = vector.shape_cast %454 : vector<4xf32> to vector<1x4xf32>
    %456 = vector.broadcast %452 : vector<8x1xf32> to vector<8x4xf32>
    %457 = vector.broadcast %455 : vector<1x4xf32> to vector<8x4xf32>
    %458 = arith.mulf %456, %457 : vector<8x4xf32>
    %459 = arith.addf %450, %458 : vector<8x4xf32>
    %460 = vector.extract_strided_slice %451 {offsets = [0, 1], sizes = [8, 1], strides = [1, 1]} : vector<8x8xf32> to vector<8x1xf32>
    %c25 = arith.constant 25 : index
    %c0_118 = arith.constant 0 : index
    %461 = vector.load %arg4[%c25, %c0_118] : memref<48x4xf32, #tpu.memory_space<vmem>>, vector<1x4xf32>
    %462 = vector.shape_cast %461 : vector<1x4xf32> to vector<4xf32>
    %463 = vector.shape_cast %462 : vector<4xf32> to vector<1x4xf32>
    %464 = vector.broadcast %460 : vector<8x1xf32> to vector<8x4xf32>
    %465 = vector.broadcast %463 : vector<1x4xf32> to vector<8x4xf32>
    %466 = arith.mulf %464, %465 : vector<8x4xf32>
    %467 = arith.addf %459, %466 : vector<8x4xf32>
    %468 = vector.extract_strided_slice %451 {offsets = [0, 2], sizes = [8, 1], strides = [1, 1]} : vector<8x8xf32> to vector<8x1xf32>
    %c26 = arith.constant 26 : index
    %c0_119 = arith.constant 0 : index
    %469 = vector.load %arg4[%c26, %c0_119] : memref<48x4xf32, #tpu.memory_space<vmem>>, vector<1x4xf32>
    %470 = vector.shape_cast %469 : vector<1x4xf32> to vector<4xf32>
    %471 = vector.shape_cast %470 : vector<4xf32> to vector<1x4xf32>
    %472 = vector.broadcast %468 : vector<8x1xf32> to vector<8x4xf32>
    %473 = vector.broadcast %471 : vector<1x4xf32> to vector<8x4xf32>
    %474 = arith.mulf %472, %473 : vector<8x4xf32>
    %475 = arith.addf %467, %474 : vector<8x4xf32>
    %476 = vector.extract_strided_slice %451 {offsets = [0, 3], sizes = [8, 1], strides = [1, 1]} : vector<8x8xf32> to vector<8x1xf32>
    %c27 = arith.constant 27 : index
    %c0_120 = arith.constant 0 : index
    %477 = vector.load %arg4[%c27, %c0_120] : memref<48x4xf32, #tpu.memory_space<vmem>>, vector<1x4xf32>
    %478 = vector.shape_cast %477 : vector<1x4xf32> to vector<4xf32>
    %479 = vector.shape_cast %478 : vector<4xf32> to vector<1x4xf32>
    %480 = vector.broadcast %476 : vector<8x1xf32> to vector<8x4xf32>
    %481 = vector.broadcast %479 : vector<1x4xf32> to vector<8x4xf32>
    %482 = arith.mulf %480, %481 : vector<8x4xf32>
    %483 = arith.addf %475, %482 : vector<8x4xf32>
    %484 = vector.extract_strided_slice %451 {offsets = [0, 4], sizes = [8, 1], strides = [1, 1]} : vector<8x8xf32> to vector<8x1xf32>
    %c28 = arith.constant 28 : index
    %c0_121 = arith.constant 0 : index
    %485 = vector.load %arg4[%c28, %c0_121] : memref<48x4xf32, #tpu.memory_space<vmem>>, vector<1x4xf32>
    %486 = vector.shape_cast %485 : vector<1x4xf32> to vector<4xf32>
    %487 = vector.shape_cast %486 : vector<4xf32> to vector<1x4xf32>
    %488 = vector.broadcast %484 : vector<8x1xf32> to vector<8x4xf32>
    %489 = vector.broadcast %487 : vector<1x4xf32> to vector<8x4xf32>
    %490 = arith.mulf %488, %489 : vector<8x4xf32>
    %491 = arith.addf %483, %490 : vector<8x4xf32>
    %492 = vector.extract_strided_slice %451 {offsets = [0, 5], sizes = [8, 1], strides = [1, 1]} : vector<8x8xf32> to vector<8x1xf32>
    %c29 = arith.constant 29 : index
    %c0_122 = arith.constant 0 : index
    %493 = vector.load %arg4[%c29, %c0_122] : memref<48x4xf32, #tpu.memory_space<vmem>>, vector<1x4xf32>
    %494 = vector.shape_cast %493 : vector<1x4xf32> to vector<4xf32>
    %495 = vector.shape_cast %494 : vector<4xf32> to vector<1x4xf32>
    %496 = vector.broadcast %492 : vector<8x1xf32> to vector<8x4xf32>
    %497 = vector.broadcast %495 : vector<1x4xf32> to vector<8x4xf32>
    %498 = arith.mulf %496, %497 : vector<8x4xf32>
    %499 = arith.addf %491, %498 : vector<8x4xf32>
    %500 = vector.extract_strided_slice %451 {offsets = [0, 6], sizes = [8, 1], strides = [1, 1]} : vector<8x8xf32> to vector<8x1xf32>
    %c30 = arith.constant 30 : index
    %c0_123 = arith.constant 0 : index
    %501 = vector.load %arg4[%c30, %c0_123] : memref<48x4xf32, #tpu.memory_space<vmem>>, vector<1x4xf32>
    %502 = vector.shape_cast %501 : vector<1x4xf32> to vector<4xf32>
    %503 = vector.shape_cast %502 : vector<4xf32> to vector<1x4xf32>
    %504 = vector.broadcast %500 : vector<8x1xf32> to vector<8x4xf32>
    %505 = vector.broadcast %503 : vector<1x4xf32> to vector<8x4xf32>
    %506 = arith.mulf %504, %505 : vector<8x4xf32>
    %507 = arith.addf %499, %506 : vector<8x4xf32>
    %508 = vector.extract_strided_slice %451 {offsets = [0, 7], sizes = [8, 1], strides = [1, 1]} : vector<8x8xf32> to vector<8x1xf32>
    %c31 = arith.constant 31 : index
    %c0_124 = arith.constant 0 : index
    %509 = vector.load %arg4[%c31, %c0_124] : memref<48x4xf32, #tpu.memory_space<vmem>>, vector<1x4xf32>
    %510 = vector.shape_cast %509 : vector<1x4xf32> to vector<4xf32>
    %511 = vector.shape_cast %510 : vector<4xf32> to vector<1x4xf32>
    %512 = vector.broadcast %508 : vector<8x1xf32> to vector<8x4xf32>
    %513 = vector.broadcast %511 : vector<1x4xf32> to vector<8x4xf32>
    %514 = arith.mulf %512, %513 : vector<8x4xf32>
    %515 = arith.addf %507, %514 : vector<8x4xf32>
    %516 = vector.extract_strided_slice %446 {offsets = [1, 0], sizes = [8, 8], strides = [1, 1]} : vector<10x8xf32> to vector<8x8xf32>
    %517 = vector.extract_strided_slice %516 {offsets = [0, 0], sizes = [8, 1], strides = [1, 1]} : vector<8x8xf32> to vector<8x1xf32>
    %c32 = arith.constant 32 : index
    %c0_125 = arith.constant 0 : index
    %518 = vector.load %arg4[%c32, %c0_125] : memref<48x4xf32, #tpu.memory_space<vmem>>, vector<1x4xf32>
    %519 = vector.shape_cast %518 : vector<1x4xf32> to vector<4xf32>
    %520 = vector.shape_cast %519 : vector<4xf32> to vector<1x4xf32>
    %521 = vector.broadcast %517 : vector<8x1xf32> to vector<8x4xf32>
    %522 = vector.broadcast %520 : vector<1x4xf32> to vector<8x4xf32>
    %523 = arith.mulf %521, %522 : vector<8x4xf32>
    %524 = arith.addf %515, %523 : vector<8x4xf32>
    %525 = vector.extract_strided_slice %516 {offsets = [0, 1], sizes = [8, 1], strides = [1, 1]} : vector<8x8xf32> to vector<8x1xf32>
    %c33 = arith.constant 33 : index
    %c0_126 = arith.constant 0 : index
    %526 = vector.load %arg4[%c33, %c0_126] : memref<48x4xf32, #tpu.memory_space<vmem>>, vector<1x4xf32>
    %527 = vector.shape_cast %526 : vector<1x4xf32> to vector<4xf32>
    %528 = vector.shape_cast %527 : vector<4xf32> to vector<1x4xf32>
    %529 = vector.broadcast %525 : vector<8x1xf32> to vector<8x4xf32>
    %530 = vector.broadcast %528 : vector<1x4xf32> to vector<8x4xf32>
    %531 = arith.mulf %529, %530 : vector<8x4xf32>
    %532 = arith.addf %524, %531 : vector<8x4xf32>
    %533 = vector.extract_strided_slice %516 {offsets = [0, 2], sizes = [8, 1], strides = [1, 1]} : vector<8x8xf32> to vector<8x1xf32>
    %c34 = arith.constant 34 : index
    %c0_127 = arith.constant 0 : index
    %534 = vector.load %arg4[%c34, %c0_127] : memref<48x4xf32, #tpu.memory_space<vmem>>, vector<1x4xf32>
    %535 = vector.shape_cast %534 : vector<1x4xf32> to vector<4xf32>
    %536 = vector.shape_cast %535 : vector<4xf32> to vector<1x4xf32>
    %537 = vector.broadcast %533 : vector<8x1xf32> to vector<8x4xf32>
    %538 = vector.broadcast %536 : vector<1x4xf32> to vector<8x4xf32>
    %539 = arith.mulf %537, %538 : vector<8x4xf32>
    %540 = arith.addf %532, %539 : vector<8x4xf32>
    %541 = vector.extract_strided_slice %516 {offsets = [0, 3], sizes = [8, 1], strides = [1, 1]} : vector<8x8xf32> to vector<8x1xf32>
    %c35 = arith.constant 35 : index
    %c0_128 = arith.constant 0 : index
    %542 = vector.load %arg4[%c35, %c0_128] : memref<48x4xf32, #tpu.memory_space<vmem>>, vector<1x4xf32>
    %543 = vector.shape_cast %542 : vector<1x4xf32> to vector<4xf32>
    %544 = vector.shape_cast %543 : vector<4xf32> to vector<1x4xf32>
    %545 = vector.broadcast %541 : vector<8x1xf32> to vector<8x4xf32>
    %546 = vector.broadcast %544 : vector<1x4xf32> to vector<8x4xf32>
    %547 = arith.mulf %545, %546 : vector<8x4xf32>
    %548 = arith.addf %540, %547 : vector<8x4xf32>
    %549 = vector.extract_strided_slice %516 {offsets = [0, 4], sizes = [8, 1], strides = [1, 1]} : vector<8x8xf32> to vector<8x1xf32>
    %c36 = arith.constant 36 : index
    %c0_129 = arith.constant 0 : index
    %550 = vector.load %arg4[%c36, %c0_129] : memref<48x4xf32, #tpu.memory_space<vmem>>, vector<1x4xf32>
    %551 = vector.shape_cast %550 : vector<1x4xf32> to vector<4xf32>
    %552 = vector.shape_cast %551 : vector<4xf32> to vector<1x4xf32>
    %553 = vector.broadcast %549 : vector<8x1xf32> to vector<8x4xf32>
    %554 = vector.broadcast %552 : vector<1x4xf32> to vector<8x4xf32>
    %555 = arith.mulf %553, %554 : vector<8x4xf32>
    %556 = arith.addf %548, %555 : vector<8x4xf32>
    %557 = vector.extract_strided_slice %516 {offsets = [0, 5], sizes = [8, 1], strides = [1, 1]} : vector<8x8xf32> to vector<8x1xf32>
    %c37 = arith.constant 37 : index
    %c0_130 = arith.constant 0 : index
    %558 = vector.load %arg4[%c37, %c0_130] : memref<48x4xf32, #tpu.memory_space<vmem>>, vector<1x4xf32>
    %559 = vector.shape_cast %558 : vector<1x4xf32> to vector<4xf32>
    %560 = vector.shape_cast %559 : vector<4xf32> to vector<1x4xf32>
    %561 = vector.broadcast %557 : vector<8x1xf32> to vector<8x4xf32>
    %562 = vector.broadcast %560 : vector<1x4xf32> to vector<8x4xf32>
    %563 = arith.mulf %561, %562 : vector<8x4xf32>
    %564 = arith.addf %556, %563 : vector<8x4xf32>
    %565 = vector.extract_strided_slice %516 {offsets = [0, 6], sizes = [8, 1], strides = [1, 1]} : vector<8x8xf32> to vector<8x1xf32>
    %c38 = arith.constant 38 : index
    %c0_131 = arith.constant 0 : index
    %566 = vector.load %arg4[%c38, %c0_131] : memref<48x4xf32, #tpu.memory_space<vmem>>, vector<1x4xf32>
    %567 = vector.shape_cast %566 : vector<1x4xf32> to vector<4xf32>
    %568 = vector.shape_cast %567 : vector<4xf32> to vector<1x4xf32>
    %569 = vector.broadcast %565 : vector<8x1xf32> to vector<8x4xf32>
    %570 = vector.broadcast %568 : vector<1x4xf32> to vector<8x4xf32>
    %571 = arith.mulf %569, %570 : vector<8x4xf32>
    %572 = arith.addf %564, %571 : vector<8x4xf32>
    %573 = vector.extract_strided_slice %516 {offsets = [0, 7], sizes = [8, 1], strides = [1, 1]} : vector<8x8xf32> to vector<8x1xf32>
    %c39 = arith.constant 39 : index
    %c0_132 = arith.constant 0 : index
    %574 = vector.load %arg4[%c39, %c0_132] : memref<48x4xf32, #tpu.memory_space<vmem>>, vector<1x4xf32>
    %575 = vector.shape_cast %574 : vector<1x4xf32> to vector<4xf32>
    %576 = vector.shape_cast %575 : vector<4xf32> to vector<1x4xf32>
    %577 = vector.broadcast %573 : vector<8x1xf32> to vector<8x4xf32>
    %578 = vector.broadcast %576 : vector<1x4xf32> to vector<8x4xf32>
    %579 = arith.mulf %577, %578 : vector<8x4xf32>
    %580 = arith.addf %572, %579 : vector<8x4xf32>
    %581 = vector.extract_strided_slice %446 {offsets = [2, 0], sizes = [8, 8], strides = [1, 1]} : vector<10x8xf32> to vector<8x8xf32>
    %582 = vector.extract_strided_slice %581 {offsets = [0, 0], sizes = [8, 1], strides = [1, 1]} : vector<8x8xf32> to vector<8x1xf32>
    %c40 = arith.constant 40 : index
    %c0_133 = arith.constant 0 : index
    %583 = vector.load %arg4[%c40, %c0_133] : memref<48x4xf32, #tpu.memory_space<vmem>>, vector<1x4xf32>
    %584 = vector.shape_cast %583 : vector<1x4xf32> to vector<4xf32>
    %585 = vector.shape_cast %584 : vector<4xf32> to vector<1x4xf32>
    %586 = vector.broadcast %582 : vector<8x1xf32> to vector<8x4xf32>
    %587 = vector.broadcast %585 : vector<1x4xf32> to vector<8x4xf32>
    %588 = arith.mulf %586, %587 : vector<8x4xf32>
    %589 = arith.addf %580, %588 : vector<8x4xf32>
    %590 = vector.extract_strided_slice %581 {offsets = [0, 1], sizes = [8, 1], strides = [1, 1]} : vector<8x8xf32> to vector<8x1xf32>
    %c41 = arith.constant 41 : index
    %c0_134 = arith.constant 0 : index
    %591 = vector.load %arg4[%c41, %c0_134] : memref<48x4xf32, #tpu.memory_space<vmem>>, vector<1x4xf32>
    %592 = vector.shape_cast %591 : vector<1x4xf32> to vector<4xf32>
    %593 = vector.shape_cast %592 : vector<4xf32> to vector<1x4xf32>
    %594 = vector.broadcast %590 : vector<8x1xf32> to vector<8x4xf32>
    %595 = vector.broadcast %593 : vector<1x4xf32> to vector<8x4xf32>
    %596 = arith.mulf %594, %595 : vector<8x4xf32>
    %597 = arith.addf %589, %596 : vector<8x4xf32>
    %598 = vector.extract_strided_slice %581 {offsets = [0, 2], sizes = [8, 1], strides = [1, 1]} : vector<8x8xf32> to vector<8x1xf32>
    %c42 = arith.constant 42 : index
    %c0_135 = arith.constant 0 : index
    %599 = vector.load %arg4[%c42, %c0_135] : memref<48x4xf32, #tpu.memory_space<vmem>>, vector<1x4xf32>
    %600 = vector.shape_cast %599 : vector<1x4xf32> to vector<4xf32>
    %601 = vector.shape_cast %600 : vector<4xf32> to vector<1x4xf32>
    %602 = vector.broadcast %598 : vector<8x1xf32> to vector<8x4xf32>
    %603 = vector.broadcast %601 : vector<1x4xf32> to vector<8x4xf32>
    %604 = arith.mulf %602, %603 : vector<8x4xf32>
    %605 = arith.addf %597, %604 : vector<8x4xf32>
    %606 = vector.extract_strided_slice %581 {offsets = [0, 3], sizes = [8, 1], strides = [1, 1]} : vector<8x8xf32> to vector<8x1xf32>
    %c43 = arith.constant 43 : index
    %c0_136 = arith.constant 0 : index
    %607 = vector.load %arg4[%c43, %c0_136] : memref<48x4xf32, #tpu.memory_space<vmem>>, vector<1x4xf32>
    %608 = vector.shape_cast %607 : vector<1x4xf32> to vector<4xf32>
    %609 = vector.shape_cast %608 : vector<4xf32> to vector<1x4xf32>
    %610 = vector.broadcast %606 : vector<8x1xf32> to vector<8x4xf32>
    %611 = vector.broadcast %609 : vector<1x4xf32> to vector<8x4xf32>
    %612 = arith.mulf %610, %611 : vector<8x4xf32>
    %613 = arith.addf %605, %612 : vector<8x4xf32>
    %614 = vector.extract_strided_slice %581 {offsets = [0, 4], sizes = [8, 1], strides = [1, 1]} : vector<8x8xf32> to vector<8x1xf32>
    %c44 = arith.constant 44 : index
    %c0_137 = arith.constant 0 : index
    %615 = vector.load %arg4[%c44, %c0_137] : memref<48x4xf32, #tpu.memory_space<vmem>>, vector<1x4xf32>
    %616 = vector.shape_cast %615 : vector<1x4xf32> to vector<4xf32>
    %617 = vector.shape_cast %616 : vector<4xf32> to vector<1x4xf32>
    %618 = vector.broadcast %614 : vector<8x1xf32> to vector<8x4xf32>
    %619 = vector.broadcast %617 : vector<1x4xf32> to vector<8x4xf32>
    %620 = arith.mulf %618, %619 : vector<8x4xf32>
    %621 = arith.addf %613, %620 : vector<8x4xf32>
    %622 = vector.extract_strided_slice %581 {offsets = [0, 5], sizes = [8, 1], strides = [1, 1]} : vector<8x8xf32> to vector<8x1xf32>
    %c45 = arith.constant 45 : index
    %c0_138 = arith.constant 0 : index
    %623 = vector.load %arg4[%c45, %c0_138] : memref<48x4xf32, #tpu.memory_space<vmem>>, vector<1x4xf32>
    %624 = vector.shape_cast %623 : vector<1x4xf32> to vector<4xf32>
    %625 = vector.shape_cast %624 : vector<4xf32> to vector<1x4xf32>
    %626 = vector.broadcast %622 : vector<8x1xf32> to vector<8x4xf32>
    %627 = vector.broadcast %625 : vector<1x4xf32> to vector<8x4xf32>
    %628 = arith.mulf %626, %627 : vector<8x4xf32>
    %629 = arith.addf %621, %628 : vector<8x4xf32>
    %630 = vector.extract_strided_slice %581 {offsets = [0, 6], sizes = [8, 1], strides = [1, 1]} : vector<8x8xf32> to vector<8x1xf32>
    %c46 = arith.constant 46 : index
    %c0_139 = arith.constant 0 : index
    %631 = vector.load %arg4[%c46, %c0_139] : memref<48x4xf32, #tpu.memory_space<vmem>>, vector<1x4xf32>
    %632 = vector.shape_cast %631 : vector<1x4xf32> to vector<4xf32>
    %633 = vector.shape_cast %632 : vector<4xf32> to vector<1x4xf32>
    %634 = vector.broadcast %630 : vector<8x1xf32> to vector<8x4xf32>
    %635 = vector.broadcast %633 : vector<1x4xf32> to vector<8x4xf32>
    %636 = arith.mulf %634, %635 : vector<8x4xf32>
    %637 = arith.addf %629, %636 : vector<8x4xf32>
    %638 = vector.extract_strided_slice %581 {offsets = [0, 7], sizes = [8, 1], strides = [1, 1]} : vector<8x8xf32> to vector<8x1xf32>
    %c47 = arith.constant 47 : index
    %c0_140 = arith.constant 0 : index
    %639 = vector.load %arg4[%c47, %c0_140] : memref<48x4xf32, #tpu.memory_space<vmem>>, vector<1x4xf32>
    %640 = vector.shape_cast %639 : vector<1x4xf32> to vector<4xf32>
    %641 = vector.shape_cast %640 : vector<4xf32> to vector<1x4xf32>
    %642 = vector.broadcast %638 : vector<8x1xf32> to vector<8x4xf32>
    %643 = vector.broadcast %641 : vector<1x4xf32> to vector<8x4xf32>
    %644 = arith.mulf %642, %643 : vector<8x4xf32>
    %645 = arith.addf %637, %644 : vector<8x4xf32>
    %646 = math.tanh %645 : vector<8x4xf32>
    %647 = arith.addf %1, %646 : vector<8x4xf32>
    %648 = tpu.concatenate %647, %325 in 1 : vector<8x4xf32>, vector<8x4xf32> -> vector<8x8xf32>
    %c0_141 = arith.constant 0 : index
    %c0_142 = arith.constant 0 : index
    %c0_143 = arith.constant 0 : index
    %649 = vector.load %arg6[%c0_141, %c0_142, %c0_143] : memref<1x8x8xf32, #tpu.memory_space<vmem>>, vector<1x8x8xf32>
    %650 = vector.shape_cast %649 : vector<1x8x8xf32> to vector<8x8xf32>
    %651 = vector.shape_cast %648 : vector<8x8xf32> to vector<1x8x8xf32>
    tpu.vector_store %arg6[%c0_141, %c0_142, %c0_143], %651 {strides = array<i32>} : memref<1x8x8xf32, #tpu.memory_space<vmem>>, vector<1x8x8xf32>,
    return
  }
  func.func @transform_0(%arg0: i32) -> (i32, i32, i32) {
    %c0_i32 = arith.constant 0 : i32
    %c0_i32_0 = arith.constant 0 : i32
    %c0_i32_1 = arith.constant 0 : i32
    return %arg0, %c0_i32, %c0_i32_0 : i32, i32, i32
  }
  func.func @transform_1(%arg0: i32) -> (i32, i32, i32) {
    %c0_i32 = arith.constant 0 : i32
    %c0_i32_0 = arith.constant 0 : i32
    %c0_i32_1 = arith.constant 0 : i32
    return %arg0, %c0_i32, %c0_i32_0 : i32, i32, i32
  }
  func.func @transform_2(%arg0: i32) -> (i32, i32) {
    %c0_i32 = arith.constant 0 : i32
    %c0_i32_0 = arith.constant 0 : i32
    %c0_i32_1 = arith.constant 0 : i32
    return %c0_i32, %c0_i32_0 : i32, i32
  }
  func.func @transform_3(%arg0: i32) -> (i32, i32) {
    %c0_i32 = arith.constant 0 : i32
    %c0_i32_0 = arith.constant 0 : i32
    %c0_i32_1 = arith.constant 0 : i32
    return %c0_i32, %c0_i32_0 : i32, i32
  }
  func.func @transform_4(%arg0: i32) -> (i32, i32) {
    %c0_i32 = arith.constant 0 : i32
    %c0_i32_0 = arith.constant 0 : i32
    %c0_i32_1 = arith.constant 0 : i32
    return %c0_i32, %c0_i32_0 : i32, i32
  }
  func.func @transform_5(%arg0: i32) -> (i32, i32, i32) {
    %c0_i32 = arith.constant 0 : i32
    %c0_i32_0 = arith.constant 0 : i32
    %c0_i32_1 = arith.constant 0 : i32
    return %arg0, %c0_i32, %c0_i32_0 : i32, i32, i32
  }
}

</mosaic_0001>

<bundles_post_ra>
// kernel: tpu_custom_call.1
= control target key start
LH: loop header
LB: loop body
LE: loop exit
PB: predicated region body
PF: predicated region fallthrough
CT: control target
= control target key end

     0   :  { %10 = vsyncpa [#allocation4], 0  ;;  %s2599_s0 = inlined_call_operand.vmem [shape: f32[2,8,4], index: 0, kind: input, shape index: {}]   ;;  %s2600_s1 = inlined_call_operand.vmem [shape: f32[2,8,4], index: 1, kind: input, shape index: {}]   ;;  %s2601_s2 = inlined_call_operand.vmem [shape: f32[24,8], index: 2, kind: input, shape index: {}]   ;;  %s2602_s3 = inlined_call_operand.vmem [shape: f32[48,4], index: 3, kind: input, shape index: {}]   ;;  %s2603_s4 = inlined_call_operand.vmem [shape: f32[2,12], index: 4, kind: input, shape index: {}]   ;;  %s2604_s5 = inlined_call_operand.hbm [shape: f32[2,8,8], index: 5, kind: output, shape index: {}]  }
   0x1   :  { %12 = vsyncpa [#allocation4 + $0x1], 0  ;;  %s1962_s18 = smov 0   ;;  %s1964_s19 = smov 0  }
   0x2   :  { %s1966_s20 = smov 0   ;;  %s1968_s21 = smov 0  }
   0x3 LB: > { %s1983_s22 = sadd.s32 4294967295, %s1918_s21   ;;  %s1645_s23 = sadd.s32 4294967294, %s1918_s21   ;;  %s1918_s21 = sphi %s1968_s21, %s2610_s21   ;;  %s1914_s20 = sphi %s1966_s20, %s2609_s20   ;;  %s1910_s19 = sphi %s1964_s19, %s2608_s19   ;;  %s1906_s18 = sphi %s1962_s18, %s2607_s18  }
   0x4   : > { %s1987_s24 = sadd.s32 1, %s1918_s21   ;;  %s140_s25 = sadd.s32 1, %s1914_s20 }
   0x5   : > { %s137_s26 = ssub.s32 %s1918_s21, %s1987_s24  ;;  %p150_p0 = scmp.ne.s32.totalorder %s1914_s20, %s1910_s19 }
   0x6   : > { %p138_p1 = scmp.eq.s32.totalorder %s137_s26, 0  ;;  %p151_p2 = scmp.eq.s32.totalorder %s1983_s22, 1 }
   0x7   : > { %p156_p3 = scmp.ne.s32.totalorder %s1910_s19, %s1906_s18  ;;  %p157_p4 = scmp.eq.s32.totalorder %s1645_s23, 1 }
   0x8   : > { %s1998_s27 = scalar_select %p138_p1, %s1914_s20, %s140_s25  }
   0x9   : > { %p2000_p5 = por %p151_p2, %p150_p0  ;;  %p2004_p6 = por %p157_p4, %p156_p3 }
   0xa   : > { %p1648_p7 = scmp.ge.s32.totalorder %s1918_s21, 1  ;;  %p198_p8 = scmp.lt.s32.totalorder %s1918_s21, 3 }
   0xc   : > { %p199_p9 = pnand %p1648_p7, %p198_p8 }
   0xd   : > { %p229_p10 = scmp.lt.s32.totalorder (!%p199_p9), %s1983_s22, 1  ;;  %s1928_s10 = smov (!%p199_p9), 8  }
   0xe   : > { %202 = sbr.rel (%p199_p9) target bundleno = 1343 (0x53f), region = 40  ;;  %s1929_s23 = smov (!%p199_p9), 120  }
   0xf   : > { %s1930_s11 = smov (!%p199_p9), 4   ;;  %s1727_s13 = sshll.u32 (!%p199_p9), %s1983_s22, 7 }
  0x10   : > { %s2563_s25 = scalar_lea.hbm (!%p199_p9), %s2604_s5, %s1727_s13 }
  0x13   : > { %v241_v0 = vlaneseq  ;;  %v1920_v1 = vmov 2   ;;  %v1921_v2 = vmov 0   ;;  %s2014_s30 = scalar_select %p229_p10, %s1983_s22, 1  ;;  %vm239_vm0 = vcmask 31744   ;;  %v1653_v27 = vld [vmem:[%s2601_s2] ss:$0 sm:$0xff] }
  0x14   : > { %1782 = vset.pattern.permute.xlu1 %v1920_v1  ;;  %1780 = vset.pattern.permute.xlu0 %v1921_v2  ;;  %vm245_vm1 = vcmask 25600   ;;  %v1922_v10 = vmov 3   ;;  %v1923_v11 = vmov 1   ;;  %v2065_v30 = vld [vmem:[%s2603_s4] ss:$0 sm:$0xff]  ;;  %vm615_vm4 = vcmask 1046528  }
  0x15   : > { %v2016_v3 = vshrl.u32 %v241_v0, 7  ;;  %s1650_s6 = sshll.u32 %s2014_s30, 3  ;;  %v1654_v31 = vld [vmem:[%s2601_s2 + $0x1] ss:$0 sm:$0xff]  ;;  %v1655_v37 = vld [vmem:[%s2601_s2 + $0x2] ss:$0 sm:$0xff] }
  0x16   : > { %s232_s9 = scalar_lea.vmem %s2599_s0, %s1650_s6  ;;  %v1656_v45 = vld [vmem:[%s2601_s2 + $0x3] ss:$0 sm:$0xff]  ;;  %v1657_v51 = vld [vmem:[%s2601_s2 + $0x4] ss:$0 sm:$0xff]  ;;  %v1658_v58 = vld [vmem:[%s2601_s2 + $0x5] ss:$0 sm:$0xff]  ;;  %s236_s7 = scalar_lea.vmem %s2600_s1, %s1650_s6 }
  0x17   : > { %v243_v4 = vsub.s32 0, %v2016_v3  ;;  %v249_v5 = vsub.s32 7, %v2016_v3  ;;  %v2026_v6 = vld [vmem:[%s232_s9] sm:$0xff]  ;;  %vm772_vm5 = vcmask 1045504   ;;  %vm1558_vm8 = vcmask 64512   ;;  %s1931_s22 = smov [#allocation3]  }
  0x18   : > { %240 = vst.msk [vmem:[#allocation2 + $0x2] sm:$0xff] %vm239_vm0, %v2026_v6 }
  0x19   : > { %v244_v7 = vrot.slane %v2026_v6, %v243_v4  ;;  %v250_v8 = vrot.slane %v2026_v6, %v249_v5 }
  0x1b   : > { %246 = vst.msk [vmem:[#allocation2] sm:$0x3] %vm245_vm1, %v244_v7  ;;  %251 = vst.msk [vmem:[#allocation2 + $0xa] sm:$0x3] %vm245_vm1, %v250_v8  ;;  %v1659_v7 = vld [vmem:[%s2601_s2 + $0x6] ss:$0 sm:$0xff] }
  0x1f   : > { %v402_v13 = vld [vmem:[#allocation2 + $0x2] sm:$0xff] }
  0x20   : > { %v259_v14 = vld [vmem:[#allocation2 + $0x8] sm:$0x3] }
  0x22   : > { %v258_v9 = vld [vmem:[#allocation2] sm:$0xff]  ;;  %v331_v15 = vld [vmem:[#allocation2 + $0x9] sm:$0x3] }
  0x23   : > { %298 = vperm.xlu1 %1782, %v258_v9   ;;  %263 = vperm.xlu0 %1780, %v258_v9   ;;  %v330_v12 = vld [vmem:[#allocation2 + $0x1] sm:$0xff]  ;;  %v403_v16 = vld [vmem:[#allocation2 + $0xa] sm:$0x3] }
  0x27   : > { %1783 = vset.pattern.permute.xlu1 %v1922_v10  ;;  %1781 = vset.pattern.permute.xlu0 %v1923_v11 }
  0x28   : > { %315 = vperm.xlu1 %1783, %v258_v9   ;;  %281 = vperm.xlu0 %1781, %v258_v9  }
  0x2c   : > { %1784 = vset.pattern.permute.xlu1 %v1921_v2  ;;  %353 = vperm.xlu0 %1781, %v330_v12  }
  0x2d   : > { %335 = vperm.xlu1 %1784, %v330_v12  }
  0x30   : > { %425 = vperm.xlu0 %1781, %v402_v13  }
  0x31   : > { %1785 = vset.pattern.permute.xlu1 %v1920_v1 }
  0x32   : > { %370 = vperm.xlu1 %1785, %v330_v12  }
  0x34   : > { %1789 = vset.pattern.permute.xlu0 %v1921_v2 }
  0x35   : > { %268 = vperm.xlu0 %1789, %v259_v14  }
  0x36   : > { %1786 = vset.pattern.permute.xlu1 %v1922_v10 }
  0x37   : > { %387 = vperm.xlu1 %1786, %v330_v12   ;;  %v1660_v12 = vld [vmem:[%s2601_s2 + $0x7] ss:$0 sm:$0xff] }
  0x39   : > { %407 = vperm.xlu0 %1789, %v402_v13  }
  0x3b   : > { %1787 = vset.pattern.permute.xlu1 %v1923_v11 }
  0x3c   : > { %285 = vperm.xlu1 %1787, %v259_v14  }
  0x3d   : > { %340 = vperm.xlu0 %1789, %v331_v15  }
  0x40   : > { %1788 = vset.pattern.permute.xlu1 %v1920_v1 }
  0x41   : > { %302 = vperm.xlu1 %1788, %v259_v14   ;;  %1794 = vset.pattern.permute.xlu0 %v1920_v1 }
  0x42   : > { %374 = vperm.xlu0 %1794, %v331_v15  }
  0x45   : > { %1790 = vset.pattern.permute.xlu1 %v1922_v10 }
  0x46   : > { %319 = vperm.xlu1 %1790, %v259_v14   ;;  %1797 = vset.pattern.permute.xlu0 %v1923_v11 }
  0x47   : > { %429 = vperm.xlu0 %1797, %v403_v16  }
  0x4a   : > { %1791 = vset.pattern.permute.xlu1 %v1920_v1 }
  0x4b   : > { %442 = vperm.xlu1 %1791, %v402_v13  }
  0x4f   : > { %1792 = vset.pattern.permute.xlu1 %v1922_v10 }
  0x50   : > { %459 = vperm.xlu1 %1792, %v402_v13  }
  0x54   : > { %1793 = vset.pattern.permute.xlu1 %v1923_v11 }
  0x55   : > { %357 = vperm.xlu1 %1793, %v331_v15  }
  0x59   : > { %1795 = vset.pattern.permute.xlu1 %v1922_v10 }
  0x5a   : > { %391 = vperm.xlu1 %1795, %v331_v15  }
  0x5e   : > { %1796 = vset.pattern.permute.xlu1 %v1921_v2 }
  0x5f   : > { %412 = vperm.xlu1 %1796, %v403_v16  }
  0x63   : > { %1798 = vset.pattern.permute.xlu1 %v1920_v1 }
  0x64   : > { %446 = vperm.xlu1 %1798, %v403_v16  }
  0x68   : > { %1799 = vset.pattern.permute.xlu1 %v1922_v10 }
  0x69   : > { %463 = vperm.xlu1 %1799, %v403_v16  }
  0x6d   : > { %1800 = vset.pattern.permute.xlu1 %v1921_v2 }
  0x9e   : > { %v299_v17 = vpop.permute.xlu1 %298  ;;  %v264_v19 = vpop.permute.xlu0 %263 }
  0x9f   : > { %v275_v29 = vmul.f32 %v1653_v27, %v264_v19  ;;  %v309_v44 = vmul.f32 %v1655_v37, %v299_v17  ;;  %v1661_v19 = vld [vmem:[%s2601_s2 + $0x8] ss:$0 sm:$0xff] }
  0xa1   : > { %v277_v35 = vadd.f32 %v2065_v30, %v275_v29 }
  0xa3   : > { %v316_v18 = vpop.permute.xlu1 %315  ;;  %v282_v22 = vpop.permute.xlu0 %281 }
  0xa4   : > { %v292_v36 = vmul.f32 %v1654_v31, %v282_v22  ;;  %v326_v53 = vmul.f32 %v1656_v45, %v316_v18 }
  0xa6   : > { %v294_v40 = vadd.f32 %v292_v36, %v277_v35  ;;  %v1664_v36 = vld [vmem:[%s2601_s2 + $0xb] ss:$0 sm:$0xff] }
  0xa7   : > { %v354_v24 = vpop.permute.xlu0 %353 }
  0xa8   : > { %v336_v20 = vpop.permute.xlu1 %335  ;;  %v311_v48 = vadd.f32 %v309_v44, %v294_v40  ;;  %v364_v63 = vmul.f32 %v1658_v58, %v354_v24 }
  0xa9   : > { %v347_v57 = vmul.f32 %v1657_v51, %v336_v20 }
  0xaa   : > { %v328_v56 = vadd.f32 %v326_v53, %v311_v48  ;;  %v1926_v53 = vmov 7  }
  0xab   : > { %v2057_v26 = vpop.permute.xlu0 %425 }
  0xac   : > { %v349_v0 = vadd.f32 %v347_v57, %v328_v56  ;;  %v1665_v57 = vld [vmem:[%s2602_s3] ss:$0 sm:$0xff] }
  0xad   : > { %v371_v21 = vpop.permute.xlu1 %370 }
  0xae   : > { %v366_v14 = vadd.f32 %v364_v63, %v349_v0  ;;  %v381_v15 = vmul.f32 %v1659_v7, %v371_v21  ;;  %v1668_v0 = vld [vmem:[%s2602_s3 + $0x3] ss:$0 sm:$0xff] }
  0xb0   : > { %v269_v32 = vpop.permute.xlu0 %268  ;;  %v383_v20 = vadd.f32 %v381_v15, %v366_v14  ;;  %v1669_v14 = vld [vmem:[%s2602_s3 + $0x4] ss:$0 sm:$0xff] }
  0xb1   : > { %v276_v33 = vmul.f32 %v1653_v27, %v269_v32 }
  0xb2   : > { %v388_v23 = vpop.permute.xlu1 %387 }
  0xb3   : > { %v278_v38 = vadd.f32 %v2065_v30, %v276_v33  ;;  %v398_v18 = vmul.f32 %v1660_v12, %v388_v23  ;;  %v1663_v23 = vld [vmem:[%s2601_s2 + $0xa] ss:$0 sm:$0xff] }
  0xb4   : > { %v408_v41 = vpop.permute.xlu0 %407 }
  0xb5   : > { %v400_v29 = vadd.f32 %v398_v18, %v383_v20  ;;  %v1671_v20 = vld [vmem:[%s2602_s3 + $0x6] ss:$0 sm:$0xff] }
  0xb7   : > { %v286_v25 = vpop.permute.xlu1 %285 }
  0xb8   : > { %v293_v39 = vmul.f32 %v1654_v31, %v286_v25  ;;  %v341_v49 = vpop.permute.xlu0 %340  ;;  %v1662_v31 = vld [vmem:[%s2601_s2 + $0x9] ss:$0 sm:$0xff] }
  0xb9   : > { %v348_v55 = vmul.f32 %v1657_v51, %v341_v49  ;;  %v436_v35 = vmul.f32 %v1662_v31, %v2057_v26 }
  0xba   : > { %v295_v46 = vadd.f32 %v293_v39, %v278_v38 }
  0xbc   : > { %v303_v28 = vpop.permute.xlu1 %302 }
  0xbd   : > { %v310_v43 = vmul.f32 %v1655_v37, %v303_v28  ;;  %v375_v60 = vpop.permute.xlu0 %374  ;;  %v419_v28 = vmul.f32 %v1661_v19, %v408_v41 }
  0xbe   : > { %v382_v9 = vmul.f32 %v1659_v7, %v375_v60 }
  0xbf   : > { %v312_v50 = vadd.f32 %v310_v43, %v295_v46 }
  0xc1   : > { %v320_v34 = vpop.permute.xlu1 %319 }
  0xc2   : > { %v327_v47 = vmul.f32 %v1656_v45, %v320_v34  ;;  %v430_v24 = vpop.permute.xlu0 %429  ;;  %v421_v34 = vadd.f32 %v419_v28, %v400_v29  ;;  %v1675_v28 = vld [vmem:[%s2602_s3 + $0xa] ss:$0 sm:$0xff] }
  0xc3   : > { %v437_v21 = vmul.f32 %v1662_v31, %v430_v24 }
  0xc4   : > { %v329_v54 = vadd.f32 %v327_v47, %v312_v50  ;;  %v438_v41 = vadd.f32 %v436_v35, %v421_v34  ;;  %v1677_v34 = vld [vmem:[%s2602_s3 + $0xc] ss:$0 sm:$0xff] }
  0xc6   : > { %v443_v42 = vpop.permute.xlu1 %442  ;;  %v350_v61 = vadd.f32 %v348_v55, %v329_v54  ;;  %v1927_v54 = vmov 5  }
  0xc7   : > { %v453_v39 = vmul.f32 %v1663_v23, %v443_v42  ;;  %v1924_v42 = vmov 6  }
  0xc9   : > { %v455_v46 = vadd.f32 %v453_v39, %v438_v41  ;;  %v1676_v41 = vld [vmem:[%s2602_s3 + $0xb] ss:$0 sm:$0xff] }
  0xcb   : > { %v460_v52 = vpop.permute.xlu1 %459 }
  0xcc   : > { %v470_v40 = vmul.f32 %v1664_v36, %v460_v52  ;;  %v1925_v52 = vmov 4  }
  0xce   : > { %v472_v48 = vadd.f32 %v470_v40, %v455_v46 }
  0xd0   : > { %v358_v59 = vpop.permute.xlu1 %357  ;;  %v476_v51 = vmul.f32 0.01, %v472_v48  ;;  %vm474_vm3 = vcmp.gt.f32.partialorder %v472_v48, 0.0 }
  0xd1   : > { %v365_v62 = vmul.f32 %v1658_v58, %v358_v59 }
  0xd2   : > { %v478_v26 = vsel %vm474_vm3, %v472_v48, %v476_v51 }
  0xd3   : > { %v367_v8 = vadd.f32 %v365_v62, %v350_v61  ;;  %v1666_v61 = vld [vmem:[%s2602_s3 + $0x1] ss:$0 sm:$0xff] }
  0xd5   : > { %v392_v13 = vpop.permute.xlu1 %391  ;;  %v384_v16 = vadd.f32 %v382_v9, %v367_v8  ;;  %v1667_v8 = vld [vmem:[%s2602_s3 + $0x2] ss:$0 sm:$0xff] }
  0xd6   : > { %v399_v17 = vmul.f32 %v1660_v12, %v392_v13 }
  0xd8   : > { %v401_v25 = vadd.f32 %v399_v17, %v384_v16  ;;  %v1673_v16 = vld [vmem:[%s2602_s3 + $0x8] ss:$0 sm:$0xff] }
  0xda   : > { %v413_v22 = vpop.permute.xlu1 %412 }
  0xdb   : > { %v420_v27 = vmul.f32 %v1661_v19, %v413_v22  ;;  %v1670_v22 = vld [vmem:[%s2602_s3 + $0x5] ss:$0 sm:$0xff] }
  0xdd   : > { %v422_v32 = vadd.f32 %v420_v27, %v401_v25 }
  0xdf   : > { %v447_v33 = vpop.permute.xlu1 %446  ;;  %v439_v37 = vadd.f32 %v437_v21, %v422_v32  ;;  %v1674_v32 = vld [vmem:[%s2602_s3 + $0x9] ss:$0 sm:$0xff] }
  0xe0   : > { %v454_v38 = vmul.f32 %v1663_v23, %v447_v33 }
  0xe2   : > { %v456_v44 = vadd.f32 %v454_v38, %v439_v37 }
  0xe4   : > { %v464_v43 = vpop.permute.xlu1 %463 }
  0xe5   : > { %v471_v45 = vmul.f32 %v1664_v36, %v464_v43  ;;  %v1672_v36 = vld [vmem:[%s2602_s3 + $0x7] ss:$0 sm:$0xff] }
  0xe7   : > { %v473_v47 = vadd.f32 %v471_v45, %v456_v44 }
  0xe9   : > { %vm475_vm2 = vcmp.gt.f32.partialorder %v473_v47, 0.0  ;;  %v477_v49 = vmul.f32 0.01, %v473_v47 }
  0xeb   : > { %v479_v50 = vsel %vm475_vm2, %v473_v47, %v477_v49 }
  0xec   : > { %625 = vperm.xlu0 %1797, %v479_v50   ;;  %604 = vperm.xlu1 %1800, %v479_v50  }
  0xf0   : > { %1802 = vset.pattern.permute.xlu0 %v1921_v2  ;;  %1801 = vset.pattern.permute.xlu1 %v1920_v1 }
  0xf1   : > { %483 = vperm.xlu0 %1802, %v478_v26   ;;  %645 = vperm.xlu1 %1801, %v479_v50  }
  0xf5   : > { %1805 = vset.pattern.permute.xlu0 %v1922_v10  ;;  %1803 = vset.pattern.permute.xlu1 %v1923_v11 }
  0xf6   : > { %528 = vperm.xlu0 %1805, %v478_v26   ;;  %498 = vperm.xlu1 %1803, %v478_v26  }
  0xfa   : > { %1808 = vset.pattern.permute.xlu0 %v1924_v42  ;;  %1804 = vset.pattern.permute.xlu1 %v1920_v1 }
  0xfb   : > { %573 = vperm.xlu0 %1808, %v478_v26   ;;  %513 = vperm.xlu1 %1804, %v478_v26  }
  0xff   : > { %1811 = vset.pattern.permute.xlu0 %v1925_v52  ;;  %1806 = vset.pattern.permute.xlu1 %v1925_v52 }
 0x100   : > { %685 = vperm.xlu0 %1811, %v479_v50   ;;  %543 = vperm.xlu1 %1806, %v478_v26  }
 0x104   : > { %1814 = vset.pattern.permute.xlu0 %v1926_v53  ;;  %1807 = vset.pattern.permute.xlu1 %v1927_v54 }
 0x105   : > { %745 = vperm.xlu0 %1814, %v479_v50   ;;  %558 = vperm.xlu1 %1807, %v478_v26  }
 0x109   : > { %1809 = vset.pattern.permute.xlu1 %v1926_v53  ;;  %1815 = vset.pattern.permute.xlu0 %v1921_v2 }
 0x10a   : > { %588 = vperm.xlu1 %1809, %v478_v26  }
 0x10e   : > { %1810 = vset.pattern.permute.xlu1 %v1922_v10 }
 0x10f   : > { %665 = vperm.xlu1 %1810, %v479_v50  }
 0x113   : > { %1812 = vset.pattern.permute.xlu1 %v1927_v54 }
 0x114   : > { %705 = vperm.xlu1 %1812, %v479_v50  }
 0x118   : > { %1813 = vset.pattern.permute.xlu1 %v1924_v42 }
 0x119   : > { %725 = vperm.xlu1 %1813, %v479_v50  }
 0x11d   : > { %1817 = vset.pattern.permute.xlu1 %v1921_v2 }
 0x167   : > { %v2119_v55 = vpop.permute.xlu0 %625  ;;  %v2121_v56 = vpop.permute.xlu1 %604 }
 0x168   : > { %v612_v24 = vmul.f32 %v1673_v16, %v2121_v56  ;;  %v633_v38 = vmul.f32 %v1674_v32, %v2119_v55 }
 0x16a   : > { %v617_v23 = vrot.slane %v612_v24, 1  ;;  %v637_v49 = vrot.slane %v633_v38, 1 }
 0x16c   : > { %v2126_v58 = vpop.permute.xlu0 %483  ;;  %v2128_v59 = vpop.permute.xlu1 %645 }
 0x16d   : > { %v490_v60 = vmul.f32 %v1665_v57, %v2126_v58  ;;  %v611_v17 = vmul.f32 %v1673_v16, %v2126_v58  ;;  %v653_v37 = vmul.f32 %v1675_v28, %v2128_v59  ;;  %v1680_v16 = vld [vmem:[%s2602_s3 + $0xf] ss:$0 sm:$0xff] }
 0x16f   : > { %492 = vrot.lane.b32.xlu1 %v490_v60, %s1928_s10  ;;  %v616_v27 = vrot.slane %v611_v17, 1  ;;  %v657_v48 = vrot.slane %v653_v37, 1 }
 0x171   : > { %v2135_v62 = vpop.permute.xlu1 %498  ;;  %v2141_v7 = vpop.permute.xlu0 %528  ;;  %v618_v40 = vsel %vm615_vm4, %v616_v27, %v617_v23  ;;  %v1681_v23 = vld [vmem:[%s2602_s3 + $0x10] ss:$0 sm:$0xff] }
 0x172   : > { %v505_v63 = vmul.f32 %v1666_v61, %v2135_v62  ;;  %v535_v12 = vmul.f32 %v1668_v0, %v2141_v7  ;;  %v632_v33 = vmul.f32 %v1674_v32, %v2135_v62  ;;  %v672_v50 = vmul.f32 %v1676_v41, %v2141_v7  ;;  %v1678_v0 = vld [vmem:[%s2602_s3 + $0xd] ss:$0 sm:$0xff]  ;;  %v1682_v32 = vld [vmem:[%s2602_s3 + $0x11] ss:$0 sm:$0xff] }
 0x173   : > { %v768_v38 = vmul.f32 %v1681_v23, %v2126_v58 }
 0x174   : > { %507 = vrot.lane.b32.xlu1 %v505_v63, %s1928_s10  ;;  %v636_v47 = vrot.slane %v632_v33, 1  ;;  %v785_v33 = vmul.f32 %v1682_v32, %v2135_v62 }
 0x176   : > { %v2147_v9 = vpop.permute.xlu1 %513  ;;  %v2162_v18 = vpop.permute.xlu0 %573  ;;  %v638_v63 = vsel %vm615_vm4, %v636_v47, %v637_v49  ;;  %v1683_v47 = vld [vmem:[%s2602_s3 + $0x12] ss:$0 sm:$0xff]  ;;  %v789_v49 = vrot.slane %v785_v33, 2 }
 0x177   : > { %v520_v13 = vmul.f32 %v1667_v8, %v2147_v9  ;;  %v580_v29 = vmul.f32 %v1671_v20, %v2162_v18  ;;  %v652_v21 = vmul.f32 %v1675_v28, %v2147_v9  ;;  %v676_v8 = vrot.slane %v672_v50, 1 }
 0x178   : > { %537 = vrot.lane.b32.xlu1 %v535_v12, %s1928_s10  ;;  %v773_v50 = vrot.slane %v768_v38, 2 }
 0x179   : > { %522 = vrot.lane.b32.xlu0 %v520_v13, %s1928_s10  ;;  %v656_v46 = vrot.slane %v652_v21, 1 }
 0x17b   : > { %v2156_v15 = vpop.permute.xlu1 %543  ;;  %v2188_v35 = vpop.permute.xlu0 %685  ;;  %v658_v26 = vsel %vm615_vm4, %v656_v46, %v657_v48 }
 0x17c   : > { %v550_v19 = vmul.f32 %v1669_v14, %v2156_v15  ;;  %v693_v43 = vmul.f32 %v1677_v34, %v2188_v35  ;;  %v692_v44 = vmul.f32 %v1677_v34, %v2156_v15 }
 0x17e   : > { %552 = vrot.lane.b32.xlu0 %v550_v19, %s1928_s10  ;;  %v697_v51 = vrot.slane %v693_v43, 1  ;;  %v696_v60 = vrot.slane %v692_v44, 1  ;;  %v769_v44 = vmul.f32 %v1681_v23, %v2121_v56 }
 0x180   : > { %v2173_v25 = vpop.permute.xlu1 %558  ;;  %v698_v13 = vsel %vm615_vm4, %v696_v60, %v697_v51  ;;  %v2221_v17 = vpop.permute.xlu0 %745  ;;  %v1685_v60 = vld [vmem:[%s2602_s3 + $0x14] ss:$0 sm:$0xff] }
 0x181   : > { %v565_v31 = vmul.f32 %v1670_v22, %v2173_v25  ;;  %v712_v14 = vmul.f32 %v1678_v0, %v2173_v25  ;;  %v1679_v22 = vld [vmem:[%s2602_s3 + $0xe] ss:$0 sm:$0xff]  ;;  %v753_v28 = vmul.f32 %v1680_v16, %v2221_v17 }
 0x182   : > { %582 = vrot.lane.b32.xlu0 %v580_v29, %s1928_s10  ;;  %v732_v21 = vmul.f32 %v1679_v22, %v2162_v18 }
 0x183   : > { %567 = vrot.lane.b32.xlu1 %v565_v31, %s1928_s10  ;;  %v716_v29 = vrot.slane %v712_v14, 1  ;;  %v757_v43 = vrot.slane %v753_v28, 1 }
 0x184   : > { %v736_v46 = vrot.slane %v732_v21, 1 }
 0x185   : > { %v2197_v39 = vpop.permute.xlu1 %588 }
 0x186   : > { %v595_v45 = vmul.f32 %v1672_v36, %v2197_v39  ;;  %619 = vrot.lane.b32.xlu0 %v618_v40, %s1928_s10  ;;  %v752_v24 = vmul.f32 %v1680_v16, %v2197_v39 }
 0x188   : > { %597 = vrot.lane.b32.xlu1 %v595_v45, %s1928_s10  ;;  %v756_v37 = vrot.slane %v752_v24, 1  ;;  %v1684_v45 = vld [vmem:[%s2602_s3 + $0x13] ss:$0 sm:$0xff] }
 0x18a   : > { %v666_v57 = vpop.permute.xlu1 %665  ;;  %659 = vrot.lane.b32.xlu0 %v658_v26, %s1928_s10  ;;  %v758_v58 = vsel %vm615_vm4, %v756_v37, %v757_v43  ;;  %v817_v26 = vmul.f32 %v1684_v45, %v2141_v7  ;;  %v834_v7 = vmul.f32 %v1685_v60, %v2188_v35  ;;  %v1687_v35 = vld [vmem:[%s2602_s3 + $0x16] ss:$0 sm:$0xff] }
 0x18b   : > { %v673_v61 = vmul.f32 %v1676_v41, %v666_v57  ;;  %v786_v41 = vmul.f32 %v1682_v32, %v2119_v55  ;;  %v818_v48 = vmul.f32 %v1684_v45, %v666_v57  ;;  %v801_v55 = vmul.f32 %v1683_v47, %v2147_v9  ;;  %v1686_v9 = vld [vmem:[%s2602_s3 + $0x15] ss:$0 sm:$0xff] }
 0x18c   : > { %639 = vrot.lane.b32.xlu1 %v638_v63, %s1928_s10  ;;  %v774_v57 = vrot.slane %v769_v44, 2  ;;  %v821_v16 = vrot.slane %v817_v26, 2  ;;  %v865_v21 = vmul.f32 %v1687_v35, %v2162_v18 }
 0x18d   : > { %v677_v12 = vrot.slane %v673_v61, 1  ;;  %v790_v51 = vrot.slane %v786_v41, 2  ;;  %v802_v61 = vmul.f32 %v1683_v47, %v2128_v59  ;;  %v822_v63 = vrot.slane %v818_v48, 2 }
 0x18e   : > { %699 = vrot.lane.b32.xlu0 %v698_v13, %s1928_s10  ;;  %v775_v13 = vsel %vm772_vm5, %v773_v50, %v774_v57  ;;  %v805_v14 = vrot.slane %v801_v55, 2  ;;  %v849_v59 = vmul.f32 %v1686_v9, %v2173_v25  ;;  %v869_v37 = vrot.slane %v865_v21, 2 }
 0x18f   : > { %v706_v19 = vpop.permute.xlu1 %705  ;;  %v678_v20 = vsel %vm615_vm4, %v676_v8, %v677_v12  ;;  %v791_v8 = vsel %vm772_vm5, %v789_v49, %v790_v51  ;;  %v833_v12 = vmul.f32 %v1685_v60, %v2156_v15  ;;  %v823_v24 = vsel %vm772_vm5, %v821_v16, %v822_v63 }
 0x190   : > { %v713_v27 = vmul.f32 %v1678_v0, %v706_v19  ;;  %679 = vrot.lane.b32.xlu1 %v678_v20, %s1928_s10  ;;  %v850_v0 = vmul.f32 %v1686_v9, %v706_v19  ;;  %v806_v20 = vrot.slane %v802_v61, 2  ;;  %v1688_v19 = vld [vmem:[%s2602_s3 + $0x17] ss:$0 sm:$0xff]  ;;  %v853_v32 = vrot.slane %v849_v59, 2 }
 0x191   : > { %v881_v15 = vmul.f32 %v1688_v19, %v2197_v39 }
 0x192   : > { %v717_v31 = vrot.slane %v713_v27, 1  ;;  %v838_v27 = vrot.slane %v834_v7, 2  ;;  %v807_v25 = vsel %vm772_vm5, %v805_v14, %v806_v20 }
 0x193   : > { %v885_v39 = vrot.slane %v881_v15, 2 }
 0x194   : > { %v726_v34 = vpop.permute.xlu1 %725  ;;  %v718_v36 = vsel %vm615_vm4, %v716_v29, %v717_v31  ;;  %v837_v29 = vrot.slane %v833_v12, 2  ;;  %v882_v31 = vmul.f32 %v1688_v19, %v2221_v17 }
 0x195   : > { %v733_v40 = vmul.f32 %v1679_v22, %v726_v34  ;;  %719 = vrot.lane.b32.xlu1 %v718_v36, %s1928_s10  ;;  %v854_v22 = vrot.slane %v850_v0, 2  ;;  %v866_v28 = vmul.f32 %v1687_v35, %v726_v34 }
 0x196   : > { %v839_v34 = vsel %vm772_vm5, %v837_v29, %v838_v27  ;;  %v886_v36 = vrot.slane %v882_v31, 2 }
 0x197   : > { %v737_v62 = vrot.slane %v733_v40, 1  ;;  %v855_v23 = vsel %vm772_vm5, %v853_v32, %v854_v22  ;;  %v870_v33 = vrot.slane %v866_v28, 2 }
 0x198   : > { %v887_v38 = vsel %vm772_vm5, %v885_v39, %v886_v36 }
 0x199   : > { %759 = vrot.lane.b32.xlu1 %v758_v58, %s1928_s10  ;;  %v738_v56 = vsel %vm615_vm4, %v736_v46, %v737_v62  ;;  %v871_v17 = vsel %vm772_vm5, %v869_v37, %v870_v33  ;;  %v238_v37 = vld [vmem:[%s236_s7] sm:$0xff]  ;;  %s1862_s7 = sshll.u32 %s1931_s22, 4  ;;  %s1863_s7 = int_to_ptr.vmem [resolvable:$false] %s1862_s7 }
 0x19a   : > { %739 = vrot.lane.b32.xlu0 %v738_v56, %s1928_s10  ;;  %s1864_s30 = scalar_lea.vmem %s1863_s7, 256 }
 0x19d   : > { %792 = vrot.lane.b32.xlu1 %v791_v8, %s1928_s10 }
 0x19e   : > { %776 = vrot.lane.b32.xlu0 %v775_v13, %s1928_s10 }
 0x1a1   : > { %824 = vrot.lane.b32.xlu1 %v823_v24, %s1928_s10 }
 0x1a2   : > { %808 = vrot.lane.b32.xlu0 %v807_v25, %s1928_s10 }
 0x1a5   : > { %856 = vrot.lane.b32.xlu1 %v855_v23, %s1928_s10 }
 0x1a6   : > { %840 = vrot.lane.b32.xlu0 %v839_v34, %s1928_s10 }
 0x1a9   : > { %888 = vrot.lane.b32.xlu1 %v887_v38, %s1928_s10 }
 0x1aa   : > { %872 = vrot.lane.b32.xlu0 %v871_v17, %s1928_s10 }
 0x1e1   : > { %v493_v18 = vpop.permute.xlu1 %492 }
 0x1e2   : > { %v495_v41 = vadd.f32 %v2065_v30, %v493_v18 }
 0x1e6   : > { %v508_v40 = vpop.permute.xlu1 %507 }
 0x1e7   : > { %v510_v43 = vadd.f32 %v508_v40, %v495_v41 }
 0x1ea   : > { %v538_v46 = vpop.permute.xlu1 %537 }
 0x1eb   : > { %v523_v44 = vpop.permute.xlu0 %522 }
 0x1ec   : > { %v525_v45 = vadd.f32 %v523_v44, %v510_v43 }
 0x1ee   : > { %v540_v62 = vadd.f32 %v538_v46, %v525_v45 }
 0x1f0   : > { %v553_v47 = vpop.permute.xlu0 %552 }
 0x1f1   : > { %v555_v48 = vadd.f32 %v553_v47, %v540_v62 }
 0x1f4   : > { %v583_v58 = vpop.permute.xlu0 %582 }
 0x1f5   : > { %v568_v49 = vpop.permute.xlu1 %567 }
 0x1f6   : > { %v570_v50 = vadd.f32 %v568_v49, %v555_v48 }
 0x1f8   : > { %v585_v55 = vadd.f32 %v583_v58, %v570_v50  ;;  %v620_v56 = vpop.permute.xlu0 %619 }
 0x1fa   : > { %v598_v51 = vpop.permute.xlu1 %597 }
 0x1fb   : > { %v600_v26 = vadd.f32 %v598_v51, %v585_v55  ;;  %v1690_v55 = vld [vmem:[%s2601_s2 + $0xc] ss:$0 sm:$0xff] }
 0x1fc   : > { %v660_v9 = vpop.permute.xlu0 %659 }
 0x1fd   : > { %v622_v60 = vadd.f32 %v620_v56, %v600_v26  ;;  %v2338_v26 = vld [vmem:[%s2603_s4 + $0x1] ss:$0 sm:$0xff] }
 0x1fe   : > { %v640_v57 = vpop.permute.xlu1 %639 }
 0x1ff   : > { %v642_v61 = vadd.f32 %v640_v57, %v622_v60 }
 0x200   : > { %v700_v8 = vpop.permute.xlu0 %699 }
 0x201   : > { %v662_v63 = vadd.f32 %v660_v9, %v642_v61  ;;  %v1691_v61 = vld [vmem:[%s2601_s2 + $0xd] ss:$0 sm:$0xff] }
 0x202   : > { %v680_v30 = vpop.permute.xlu1 %679 }
 0x203   : > { %v682_v0 = vadd.f32 %v680_v30, %v662_v63  ;;  %v1692_v30 = vld [vmem:[%s2601_s2 + $0xe] ss:$0 sm:$0xff] }
 0x205   : > { %v702_v7 = vadd.f32 %v700_v8, %v682_v0 }
 0x207   : > { %v720_v12 = vpop.permute.xlu1 %719 }
 0x208   : > { %v722_v13 = vadd.f32 %v720_v12, %v702_v7  ;;  %v1693_v7 = vld [vmem:[%s2601_s2 + $0xf] ss:$0 sm:$0xff] }
 0x20b   : > { %v760_v14 = vpop.permute.xlu1 %759 }
 0x20c   : > { %v740_v16 = vpop.permute.xlu0 %739 }
 0x20d   : > { %v742_v59 = vadd.f32 %v740_v16, %v722_v13 }
 0x20f   : > { %v793_v20 = vpop.permute.xlu1 %792  ;;  %v762_v19 = vadd.f32 %v760_v14, %v742_v59  ;;  %v1694_v59 = vld [vmem:[%s2601_s2 + $0x10] ss:$0 sm:$0xff] }
 0x210   : > { %v777_v35 = vpop.permute.xlu0 %776 }
 0x211   : > { %v779_v15 = vadd.f32 %v777_v35, %v762_v19 }
 0x213   : > { %v825_v22 = vpop.permute.xlu1 %824  ;;  %v795_v24 = vadd.f32 %v793_v20, %v779_v15  ;;  %v1695_v15 = vld [vmem:[%s2601_s2 + $0x11] ss:$0 sm:$0xff] }
 0x214   : > { %v809_v27 = vpop.permute.xlu0 %808 }
 0x215   : > { %v811_v28 = vadd.f32 %v809_v27, %v795_v24 }
 0x217   : > { %v827_v25 = vadd.f32 %v825_v22, %v811_v28  ;;  %v857_v29 = vpop.permute.xlu1 %856  ;;  %v1696_v22 = vld [vmem:[%s2601_s2 + $0x12] ss:$0 sm:$0xff] }
 0x218   : > { %v841_v31 = vpop.permute.xlu0 %840 }
 0x219   : > { %v843_v32 = vadd.f32 %v841_v31, %v827_v25 }
 0x21b   : > { %v859_v21 = vadd.f32 %v857_v29, %v843_v32  ;;  %v889_v33 = vpop.permute.xlu1 %888 }
 0x21c   : > { %v873_v23 = vpop.permute.xlu0 %872 }
 0x21d   : > { %v875_v39 = vadd.f32 %v873_v23, %v859_v21  ;;  %v1697_v21 = vld [vmem:[%s2601_s2 + $0x13] ss:$0 sm:$0xff] }
 0x21f   : > { %v891_v34 = vadd.f32 %v889_v33, %v875_v39  ;;  %v1698_v39 = vld [vmem:[%s2601_s2 + $0x14] ss:$0 sm:$0xff] }
 0x221   : > { %1854 = vtanh.f32 %v891_v34 }
 0x22e   : > { %v1855_v36 = vpop.eup %1854 }
 0x22f   : > { %894 = vrot.lane.b32.xlu0 %v1855_v36, %s1929_s23 }
 0x2a1   : > { %v895_v38 = vpop.permute.xlu0 %894 }
 0x2a2   : > { %v2298_v17 = vsub.f32 %v238_v37, %v895_v38 }
 0x2a4   : > { %898 = vst.msk [vmem:[#allocation2 + $0x2] sm:$0xff] %vm239_vm0, %v2298_v17  ;;  %v902_v18 = vrot.slane %v2298_v17, %v243_v4  ;;  %v907_v40 = vrot.slane %v2298_v17, %v249_v5 }
 0x2a6   : > { %903 = vst.msk [vmem:[#allocation2] sm:$0x3] %vm245_vm1, %v902_v18  ;;  %908 = vst.msk [vmem:[#allocation2 + $0xa] sm:$0x3] %vm245_vm1, %v907_v40 }
 0x2ab   : > { %v1059_v41 = vld [vmem:[#allocation2 + $0x2] sm:$0xff] }
 0x2ac   : > { %v916_v43 = vld [vmem:[#allocation2 + $0x8] sm:$0x3]  ;;  %1064 = vperm.xlu1 %1817, %v1059_v41  }
 0x2ad   : > { %925 = vperm.xlu0 %1815, %v916_v43   ;;  %v915_v3 = vld [vmem:[#allocation2] sm:$0xff]  ;;  %v988_v5 = vld [vmem:[#allocation2 + $0x9] sm:$0x3] }
 0x2ae   : > { %v987_v4 = vld [vmem:[#allocation2 + $0x1] sm:$0xff]  ;;  %v1060_v44 = vld [vmem:[#allocation2 + $0xa] sm:$0x3] }
 0x2b0   : > { %1818 = vset.pattern.permute.xlu1 %v1920_v1 }
 0x2b1   : > { %1816 = vset.pattern.permute.xlu0 %v1923_v11  ;;  %959 = vperm.xlu1 %1818, %v916_v43  }
 0x2b2   : > { %942 = vperm.xlu0 %1816, %v916_v43  }
 0x2b5   : > { %1819 = vset.pattern.permute.xlu1 %v1922_v10 }
 0x2b6   : > { %1820 = vset.pattern.permute.xlu0 %v1920_v1  ;;  %976 = vperm.xlu1 %1819, %v916_v43  }
 0x2b7   : > { %1099 = vperm.xlu0 %1820, %v1059_v41  }
 0x2ba   : > { %1821 = vset.pattern.permute.xlu1 %v1921_v2 }
 0x2bb   : > { %1822 = vset.pattern.permute.xlu0 %v1923_v11  ;;  %920 = vperm.xlu1 %1821, %v915_v3  }
 0x2bc   : > { %938 = vperm.xlu0 %1822, %v915_v3  }
 0x2bf   : > { %1823 = vset.pattern.permute.xlu1 %v1920_v1 }
 0x2c0   : > { %1825 = vset.pattern.permute.xlu0 %v1921_v2  ;;  %955 = vperm.xlu1 %1823, %v915_v3  }
 0x2c1   : > { %992 = vperm.xlu0 %1825, %v987_v4  }
 0x2c4   : > { %1824 = vset.pattern.permute.xlu1 %v1922_v10 }
 0x2c5   : > { %1826 = vset.pattern.permute.xlu0 %v1923_v11  ;;  %972 = vperm.xlu1 %1824, %v915_v3  }
 0x2c6   : > { %1082 = vperm.xlu0 %1826, %v1059_v41  }
 0x2c9   : > { %1116 = vperm.xlu1 %1824, %v1059_v41   ;;  %v1699_v41 = vld [vmem:[%s2601_s2 + $0x15] ss:$0 sm:$0xff] }
 0x2ca   : > { %1014 = vperm.xlu0 %1826, %v988_v5  }
 0x2cd   : > { %1827 = vset.pattern.permute.xlu1 %v1923_v11 }
 0x2ce   : > { %1833 = vset.pattern.permute.xlu0 %v1921_v2  ;;  %1010 = vperm.xlu1 %1827, %v987_v4  }
 0x2cf   : > { %1069 = vperm.xlu0 %1833, %v1060_v44  }
 0x2d2   : > { %1828 = vset.pattern.permute.xlu1 %v1920_v1 }
 0x2d3   : > { %1836 = vset.pattern.permute.xlu0 %v1922_v10  ;;  %1027 = vperm.xlu1 %1828, %v987_v4  }
 0x2d4   : > { %1120 = vperm.xlu0 %1836, %v1060_v44  }
 0x2d7   : > { %1829 = vset.pattern.permute.xlu1 %v1922_v10 }
 0x2d8   : > { %1841 = vset.pattern.permute.xlu0 %v1920_v1  ;;  %1044 = vperm.xlu1 %1829, %v987_v4   ;;  %v1700_v4 = vld [vmem:[%s2601_s2 + $0x16] ss:$0 sm:$0xff] }
 0x2dc   : > { %1830 = vset.pattern.permute.xlu1 %v1921_v2 }
 0x2dd   : > { %997 = vperm.xlu1 %1830, %v988_v5  }
 0x2e1   : > { %1831 = vset.pattern.permute.xlu1 %v1920_v1 }
 0x2e2   : > { %1031 = vperm.xlu1 %1831, %v988_v5  }
 0x2e6   : > { %1832 = vset.pattern.permute.xlu1 %v1922_v10 }
 0x2e7   : > { %1048 = vperm.xlu1 %1832, %v988_v5  }
 0x2eb   : > { %1834 = vset.pattern.permute.xlu1 %v1923_v11 }
 0x2ec   : > { %1086 = vperm.xlu1 %1834, %v1060_v44  }
 0x2f0   : > { %1835 = vset.pattern.permute.xlu1 %v1920_v1 }
 0x2f1   : > { %1103 = vperm.xlu1 %1835, %v1060_v44  }
 0x2f5   : > { %1837 = vset.pattern.permute.xlu1 %v1921_v2 }
 0x327   : > { %v1065_v45 = vpop.permute.xlu1 %1064 }
 0x328   : > { %v926_v62 = vpop.permute.xlu0 %925  ;;  %v1076_v43 = vmul.f32 %v1698_v39, %v1065_v45 }
 0x329   : > { %v933_v16 = vmul.f32 %v1690_v55, %v926_v62 }
 0x32b   : > { %v935_v25 = vadd.f32 %v2338_v26, %v933_v16 }
 0x32c   : > { %v960_v46 = vpop.permute.xlu1 %959 }
 0x32d   : > { %v943_v48 = vpop.permute.xlu0 %942  ;;  %v967_v33 = vmul.f32 %v1692_v30, %v960_v46 }
 0x32e   : > { %v950_v35 = vmul.f32 %v1691_v61, %v943_v48  ;;  %v1701_v48 = vld [vmem:[%s2601_s2 + $0x17] ss:$0 sm:$0xff] }
 0x330   : > { %v952_v32 = vadd.f32 %v950_v35, %v935_v25 }
 0x331   : > { %v977_v47 = vpop.permute.xlu1 %976 }
 0x332   : > { %v1100_v49 = vpop.permute.xlu0 %1099  ;;  %v969_v18 = vadd.f32 %v967_v33, %v952_v32  ;;  %v984_v40 = vmul.f32 %v1693_v7, %v977_v47 }
 0x333   : > { %v1110_v47 = vmul.f32 %v1700_v4, %v1100_v49 }
 0x334   : > { %v986_v46 = vadd.f32 %v984_v40, %v969_v18  ;;  %v1711_v40 = vld [vmem:[%s2602_s3 + $0x21] ss:$0 sm:$0xff] }
 0x336   : > { %v921_v58 = vpop.permute.xlu1 %920 }
 0x337   : > { %v932_v56 = vmul.f32 %v1690_v55, %v921_v58  ;;  %v939_v60 = vpop.permute.xlu0 %938 }
 0x338   : > { %v949_v9 = vmul.f32 %v1691_v61, %v939_v60 }
 0x339   : > { %v934_v57 = vadd.f32 %v2338_v26, %v932_v56 }
 0x33b   : > { %v956_v50 = vpop.permute.xlu1 %955  ;;  %v951_v0 = vadd.f32 %v949_v9, %v934_v57 }
 0x33c   : > { %v966_v8 = vmul.f32 %v1692_v30, %v956_v50  ;;  %v993_v20 = vpop.permute.xlu0 %992 }
 0x33d   : > { %v1004_v24 = vmul.f32 %v1694_v59, %v993_v20 }
 0x33e   : > { %v968_v14 = vadd.f32 %v966_v8, %v951_v0 }
 0x340   : > { %v973_v51 = vpop.permute.xlu1 %972 }
 0x341   : > { %v983_v12 = vmul.f32 %v1693_v7, %v973_v51  ;;  %v1083_v36 = vpop.permute.xlu0 %1082 }
 0x342   : > { %v1093_v5 = vmul.f32 %v1699_v41, %v1083_v36  ;;  %v1707_v36 = vld [vmem:[%s2602_s3 + $0x1d] ss:$0 sm:$0xff] }
 0x343   : > { %v985_v19 = vadd.f32 %v983_v12, %v968_v14 }
 0x344   : > { %v1117_v63 = vpop.permute.xlu1 %1116 }
 0x345   : > { %v1006_v29 = vadd.f32 %v1004_v24, %v985_v19  ;;  %v1015_v50 = vpop.permute.xlu0 %1014  ;;  %v1127_v51 = vmul.f32 %v1701_v48, %v1117_v63 }
 0x346   : > { %v1022_v60 = vmul.f32 %v1695_v15, %v1015_v50 }
 0x349   : > { %v1011_v13 = vpop.permute.xlu1 %1010 }
 0x34a   : > { %v1021_v27 = vmul.f32 %v1695_v15, %v1011_v13  ;;  %v1070_v14 = vpop.permute.xlu0 %1069 }
 0x34b   : > { %v1077_v49 = vmul.f32 %v1698_v39, %v1070_v14 }
 0x34c   : > { %v1023_v23 = vadd.f32 %v1021_v27, %v1006_v29 }
 0x34e   : > { %v1028_v28 = vpop.permute.xlu1 %1027 }
 0x34f   : > { %v1038_v31 = vmul.f32 %v1696_v22, %v1028_v28  ;;  %v1121_v19 = vpop.permute.xlu0 %1120 }
 0x350   : > { %v1128_v24 = vmul.f32 %v1701_v48, %v1121_v19 }
 0x351   : > { %v1040_v37 = vadd.f32 %v1038_v31, %v1023_v23  ;;  %v1705_v23 = vld [vmem:[%s2602_s3 + $0x1b] ss:$0 sm:$0xff] }
 0x353   : > { %v1045_v34 = vpop.permute.xlu1 %1044 }
 0x354   : > { %v1055_v38 = vmul.f32 %v1697_v21, %v1045_v34 }
 0x356   : > { %v1057_v3 = vadd.f32 %v1055_v38, %v1040_v37  ;;  %v1706_v37 = vld [vmem:[%s2602_s3 + $0x1c] ss:$0 sm:$0xff] }
 0x358   : > { %v1078_v44 = vadd.f32 %v1076_v43, %v1057_v3  ;;  %v998_v62 = vpop.permute.xlu1 %997  ;;  %v1709_v43 = vld [vmem:[%s2602_s3 + $0x1f] ss:$0 sm:$0xff] }
 0x359   : > { %v1005_v58 = vmul.f32 %v1694_v59, %v998_v62 }
 0x35a   : > { %v1095_v55 = vadd.f32 %v1093_v5, %v1078_v44  ;;  %v1710_v5 = vld [vmem:[%s2602_s3 + $0x20] ss:$0 sm:$0xff] }
 0x35b   : > { %v1007_v56 = vadd.f32 %v1005_v58, %v986_v46  ;;  %v1708_v46 = vld [vmem:[%s2602_s3 + $0x1e] ss:$0 sm:$0xff]  ;;  %v1713_v58 = vld [vmem:[%s2602_s3 + $0x23] ss:$0 sm:$0xff] }
 0x35c   : > { %v1112_v45 = vadd.f32 %v1110_v47, %v1095_v55 }
 0x35d   : > { %v1032_v57 = vpop.permute.xlu1 %1031  ;;  %v1024_v9 = vadd.f32 %v1022_v60, %v1007_v56  ;;  %v1712_v60 = vld [vmem:[%s2602_s3 + $0x22] ss:$0 sm:$0xff] }
 0x35e   : > { %v1129_v61 = vadd.f32 %v1127_v51, %v1112_v45  ;;  %v1039_v30 = vmul.f32 %v1696_v22, %v1032_v57 }
 0x360   : > { %vm1131_vm6 = vcmp.gt.f32.partialorder %v1129_v61, 0.0  ;;  %v1133_v0 = vmul.f32 0.01, %v1129_v61  ;;  %v1041_v12 = vadd.f32 %v1039_v30, %v1024_v9 }
 0x362   : > { %v1135_v8 = vsel %vm1131_vm6, %v1129_v61, %v1133_v0  ;;  %v1049_v7 = vpop.permute.xlu1 %1048 }
 0x363   : > { %v1056_v13 = vmul.f32 %v1697_v21, %v1049_v7  ;;  %1170 = vperm.xlu0 %1841, %v1135_v8  }
 0x365   : > { %v1058_v16 = vadd.f32 %v1056_v13, %v1041_v12 }
 0x367   : > { %1844 = vset.pattern.permute.xlu0 %v1927_v54  ;;  %v1087_v59 = vpop.permute.xlu1 %1086  ;;  %v1079_v63 = vadd.f32 %v1077_v49, %v1058_v16  ;;  %v1714_v49 = vld [vmem:[%s2602_s3 + $0x24] ss:$0 sm:$0xff] }
 0x368   : > { %1215 = vperm.xlu0 %1844, %v1135_v8   ;;  %v1094_v20 = vmul.f32 %v1699_v41, %v1087_v59 }
 0x36a   : > { %v1096_v15 = vadd.f32 %v1094_v20, %v1079_v63 }
 0x36c   : > { %1847 = vset.pattern.permute.xlu0 %v1926_v53  ;;  %v1104_v35 = vpop.permute.xlu1 %1103 }
 0x36d   : > { %v1111_v22 = vmul.f32 %v1700_v4, %v1104_v35  ;;  %1245 = vperm.xlu0 %1847, %v1135_v8   ;;  %v1716_v35 = vld [vmem:[%s2602_s3 + $0x26] ss:$0 sm:$0xff] }
 0x36f   : > { %v1113_v27 = vadd.f32 %v1111_v22, %v1096_v15 }
 0x371   : > { %v1130_v28 = vadd.f32 %v1128_v24, %v1113_v27  ;;  %1848 = vset.pattern.permute.xlu0 %v1922_v10 }
 0x373   : > { %vm1132_vm7 = vcmp.gt.f32.partialorder %v1130_v28, 0.0  ;;  %v1134_v25 = vmul.f32 0.01, %v1130_v28 }
 0x375   : > { %v1136_v29 = vsel %vm1132_vm7, %v1130_v28, %v1134_v25  ;;  %v1715_v25 = vld [vmem:[%s2602_s3 + $0x25] ss:$0 sm:$0xff] }
 0x376   : > { %1321 = vperm.xlu0 %1848, %v1136_v29   ;;  %1261 = vperm.xlu1 %1837, %v1136_v29  }
 0x37a   : > { %1851 = vset.pattern.permute.xlu0 %v1924_v42  ;;  %1838 = vset.pattern.permute.xlu1 %v1923_v11 }
 0x37b   : > { %1381 = vperm.xlu0 %1851, %v1136_v29   ;;  %1281 = vperm.xlu1 %1838, %v1136_v29  }
 0x37f   : > { %1839 = vset.pattern.permute.xlu1 %v1921_v2  ;;  %1853 = vset.pattern.permute.xlu0 %v1926_v53 }
 0x380   : > { %1140 = vperm.xlu1 %1839, %v1135_v8  }
 0x384   : > { %1840 = vset.pattern.permute.xlu1 %v1923_v11  ;;  %v1702_v11 = vld [vmem:[%s2602_s3 + $0x18] ss:$0 sm:$0xff] }
 0x385   : > { %1155 = vperm.xlu1 %1840, %v1135_v8  }
 0x389   : > { %1842 = vset.pattern.permute.xlu1 %v1922_v10 }
 0x38a   : > { %1185 = vperm.xlu1 %1842, %v1135_v8  }
 0x38e   : > { %1843 = vset.pattern.permute.xlu1 %v1925_v52 }
 0x38f   : > { %1200 = vperm.xlu1 %1843, %v1135_v8  }
 0x393   : > { %1845 = vset.pattern.permute.xlu1 %v1924_v42 }
 0x394   : > { %1230 = vperm.xlu1 %1845, %v1135_v8  }
 0x398   : > { %1846 = vset.pattern.permute.xlu1 %v1920_v1 }
 0x399   : > { %1301 = vperm.xlu1 %1846, %v1136_v29  }
 0x39d   : > { %1849 = vset.pattern.permute.xlu1 %v1925_v52  ;;  %v1704_v52 = vld [vmem:[%s2602_s3 + $0x1a] ss:$0 sm:$0xff] }
 0x39e   : > { %1341 = vperm.xlu1 %1849, %v1136_v29  }
 0x3a2   : > { %1850 = vset.pattern.permute.xlu1 %v1927_v54 }
 0x3a3   : > { %1361 = vperm.xlu1 %1850, %v1136_v29  }
 0x3a7   : > { %1852 = vset.pattern.permute.xlu1 %v1926_v53  ;;  %v1703_v53 = vld [vmem:[%s2602_s3 + $0x19] ss:$0 sm:$0xff] }
 0x3a8   : > { %1401 = vperm.xlu1 %1852, %v1136_v29  }
 0x3de   : > { %v2403_v54 = vpop.permute.xlu0 %1170 }
 0x3df   : > { %v1177_v31 = vmul.f32 %v1704_v52, %v2403_v54  ;;  %v1308_v7 = vmul.f32 %v1712_v60, %v2403_v54  ;;  %v1718_v52 = vld [vmem:[%s2602_s3 + $0x28] ss:$0 sm:$0xff] }
 0x3e1   : > { %v1312_v59 = vrot.slane %v1308_v7, 1 }
 0x3e3   : > { %v2418_v39 = vpop.permute.xlu0 %1215 }
 0x3e4   : > { %v1222_v38 = vmul.f32 %v1707_v36, %v2418_v39  ;;  %v1717_v36 = vld [vmem:[%s2602_s3 + $0x27] ss:$0 sm:$0xff] }
 0x3e8   : > { %v2431_v18 = vpop.permute.xlu0 %1245 }
 0x3e9   : > { %v1252_v48 = vmul.f32 %v1709_v43, %v2431_v18  ;;  %v1720_v43 = vld [vmem:[%s2602_s3 + $0x2a] ss:$0 sm:$0xff] }
 0x3f1   : > { %v2390_v2 = vpop.permute.xlu1 %1261  ;;  %v2457_v47 = vpop.permute.xlu0 %1321 }
 0x3f2   : > { %v1269_v50 = vmul.f32 %v1710_v5, %v2390_v2  ;;  %v1329_v57 = vmul.f32 %v1713_v58, %v2457_v47 }
 0x3f4   : > { %v1273_v30 = vrot.slane %v1269_v50, 1  ;;  %v1333_v13 = vrot.slane %v1329_v57, 1 }
 0x3f6   : > { %v2392_v10 = vpop.permute.xlu1 %1281  ;;  %v1382_v15 = vpop.permute.xlu0 %1381 }
 0x3f7   : > { %v1289_v44 = vmul.f32 %v1711_v40, %v2392_v10  ;;  %v1389_v29 = vmul.f32 %v1716_v35, %v1382_v15 }
 0x3f9   : > { %v1293_v61 = vrot.slane %v1289_v44, 1 }
 0x3fb   : > { %v2397_v42 = vpop.permute.xlu1 %1140 }
 0x3fc   : > { %v1147_v1 = vmul.f32 %v1702_v11, %v2397_v42  ;;  %v1268_v62 = vmul.f32 %v1710_v5, %v2397_v42  ;;  %v1719_v5 = vld [vmem:[%s2602_s3 + $0x29] ss:$0 sm:$0xff] }
 0x3fe   : > { %1149 = vrot.lane.b32.xlu1 %v1147_v1, %s1928_s10  ;;  %v1272_v9 = vrot.slane %v1268_v62, 1 }
 0x400   : > { %v2410_v32 = vpop.permute.xlu1 %1155  ;;  %v1274_v16 = vsel %vm615_vm4, %v1272_v9, %v1273_v30 }
 0x401   : > { %v1162_v21 = vmul.f32 %v1703_v53, %v2410_v32  ;;  %v1288_v3 = vmul.f32 %v1711_v40, %v2410_v32  ;;  %v1368_v53 = vmul.f32 %v1715_v25, %v2418_v39  ;;  %v1393_v40 = vrot.slane %v1389_v29, 1 }
 0x402   : > { %1179 = vrot.lane.b32.xlu1 %v1177_v31, %s1928_s10  ;;  %v1424_v31 = vmul.f32 %v1718_v52, %v2397_v42 }
 0x403   : > { %1164 = vrot.lane.b32.xlu0 %v1162_v21, %s1928_s10  ;;  %v1292_v55 = vrot.slane %v1288_v3, 1  ;;  %v1372_v3 = vrot.slane %v1368_v53, 1 }
 0x404   : > { %v1428_v44 = vrot.slane %v1424_v31, 2 }
 0x405   : > { %v2420_v33 = vpop.permute.xlu1 %1185  ;;  %v1294_v8 = vsel %vm615_vm4, %v1292_v55, %v1293_v61  ;;  %v1440_v55 = vmul.f32 %v1719_v5, %v2410_v32 }
 0x406   : > { %v1192_v34 = vmul.f32 %v1705_v23, %v2420_v33  ;;  %v1328_v56 = vmul.f32 %v1713_v58, %v2420_v33 }
 0x408   : > { %1194 = vrot.lane.b32.xlu0 %v1192_v34, %s1928_s10  ;;  %v1332_v0 = vrot.slane %v1328_v56, 1 }
 0x40a   : > { %v2436_v41 = vpop.permute.xlu1 %1200  ;;  %v1334_v20 = vsel %vm615_vm4, %v1332_v0, %v1333_v13 }
 0x40b   : > { %v1207_v4 = vmul.f32 %v1706_v37, %v2436_v41  ;;  %v1348_v19 = vmul.f32 %v1714_v49, %v2436_v41 }
 0x40c   : > { %1224 = vrot.lane.b32.xlu0 %v1222_v38, %s1928_s10  ;;  %v1425_v38 = vmul.f32 %v1718_v52, %v2390_v2 }
 0x40d   : > { %1209 = vrot.lane.b32.xlu1 %v1207_v4, %s1928_s10  ;;  %v1352_v11 = vrot.slane %v1348_v19, 1  ;;  %v1408_v4 = vmul.f32 %v1717_v36, %v2431_v18  ;;  %v1723_v19 = vld [vmem:[%s2602_s3 + $0x2d] ss:$0 sm:$0xff] }
 0x40e   : > { %v1429_v50 = vrot.slane %v1425_v38, 2 }
 0x40f   : > { %v2461_v51 = vpop.permute.xlu1 %1230  ;;  %v1412_v57 = vrot.slane %v1408_v4, 1 }
 0x410   : > { %v1237_v45 = vmul.f32 %v1708_v46, %v2461_v51  ;;  %1254 = vrot.lane.b32.xlu0 %v1252_v48, %s1928_s10  ;;  %v1388_v27 = vmul.f32 %v1716_v35, %v2461_v51  ;;  %v1456_v48 = vmul.f32 %v1720_v43, %v2403_v54  ;;  %v1721_v54 = vld [vmem:[%s2602_s3 + $0x2b] ss:$0 sm:$0xff]  ;;  %v1430_v0 = vsel %vm772_vm5, %v1428_v44, %v1429_v50 }
 0x411   : > { %v1472_v7 = vmul.f32 %v1721_v54, %v2420_v33 }
 0x412   : > { %1239 = vrot.lane.b32.xlu1 %v1237_v45, %s1928_s10  ;;  %v1392_v21 = vrot.slane %v1388_v27, 1  ;;  %v1441_v45 = vmul.f32 %v1719_v5, %v2392_v10  ;;  %v1460_v32 = vrot.slane %v1456_v48, 2  ;;  %v1724_v10 = vld [vmem:[%s2602_s3 + $0x2e] ss:$0 sm:$0xff] }
 0x413   : > { %v1476_v33 = vrot.slane %v1472_v7, 2 }
 0x414   : > { %1295 = vrot.lane.b32.xlu0 %v1294_v8, %s1928_s10  ;;  %v1302_v12 = vpop.permute.xlu1 %1301  ;;  %v1394_v46 = vsel %vm615_vm4, %v1392_v21, %v1393_v40  ;;  %v1444_v8 = vrot.slane %v1440_v55, 2 }
 0x415   : > { %v1309_v14 = vmul.f32 %v1712_v60, %v1302_v12  ;;  %v1457_v62 = vmul.f32 %v1720_v43, %v1302_v12  ;;  %v1722_v60 = vld [vmem:[%s2602_s3 + $0x2c] ss:$0 sm:$0xff] }
 0x416   : > { %1275 = vrot.lane.b32.xlu1 %v1274_v16, %s1928_s10  ;;  %v1488_v12 = vmul.f32 %v1722_v60, %v2436_v41  ;;  %v1445_v16 = vrot.slane %v1441_v45, 2 }
 0x417   : > { %v1313_v63 = vrot.slane %v1309_v14, 1  ;;  %v1461_v61 = vrot.slane %v1457_v62, 2  ;;  %v1473_v14 = vmul.f32 %v1721_v54, %v2457_v47 }
 0x418   : > { %1335 = vrot.lane.b32.xlu0 %v1334_v20, %s1928_s10  ;;  %v1521_v20 = vmul.f32 %v1724_v10, %v1382_v15  ;;  %v1492_v41 = vrot.slane %v1488_v12, 2  ;;  %v1446_v47 = vsel %vm772_vm5, %v1444_v8, %v1445_v16  ;;  %v1725_v15 = vld [vmem:[%s2602_s3 + $0x2f] ss:$0 sm:$0xff] }
 0x419   : > { %v1342_v22 = vpop.permute.xlu1 %1341  ;;  %v1314_v24 = vsel %vm615_vm4, %v1312_v59, %v1313_v63  ;;  %v1462_v63 = vsel %vm772_vm5, %v1460_v32, %v1461_v61  ;;  %v1536_v52 = vmul.f32 %v1725_v15, %v2431_v18 }
 0x41a   : > { %v1349_v28 = vmul.f32 %v1714_v49, %v1342_v22  ;;  %1315 = vrot.lane.b32.xlu1 %v1314_v24, %s1928_s10  ;;  %v1489_v9 = vmul.f32 %v1722_v60, %v1342_v22  ;;  %v1520_v49 = vmul.f32 %v1724_v10, %v2461_v51  ;;  %v1477_v22 = vrot.slane %v1473_v14, 2 }
 0x41b   : > { %v1504_v51 = vmul.f32 %v1723_v19, %v2418_v39  ;;  %v1540_v21 = vrot.slane %v1536_v52, 2 }
 0x41c   : > { %v1353_v1 = vrot.slane %v1349_v28, 1  ;;  %v1493_v59 = vrot.slane %v1489_v9, 2  ;;  %v1524_v24 = vrot.slane %v1520_v49, 2  ;;  %v1525_v28 = vrot.slane %v1521_v20, 2 }
 0x41e   : > { %v1362_v23 = vpop.permute.xlu1 %1361  ;;  %v1354_v34 = vsel %vm615_vm4, %v1352_v11, %v1353_v1  ;;  %v1494_v27 = vsel %vm772_vm5, %v1492_v41, %v1493_v59  ;;  %v1478_v11 = vsel %vm772_vm5, %v1476_v33, %v1477_v22  ;;  %v1508_v1 = vrot.slane %v1504_v51, 2 }
 0x41f   : > { %v1369_v37 = vmul.f32 %v1715_v25, %v1362_v23  ;;  %1355 = vrot.lane.b32.xlu1 %v1354_v34, %s1928_s10  ;;  %v1505_v35 = vmul.f32 %v1723_v19, %v1362_v23  ;;  %v1526_v39 = vsel %vm772_vm5, %v1524_v24, %v1525_v28 }
 0x421   : > { %v1373_v42 = vrot.slane %v1369_v37, 1  ;;  %v1509_v25 = vrot.slane %v1505_v35, 2 }
 0x423   : > { %1395 = vrot.lane.b32.xlu1 %v1394_v46, %s1928_s10  ;;  %v1402_v2 = vpop.permute.xlu1 %1401  ;;  %v1374_v58 = vsel %vm615_vm4, %v1372_v3, %v1373_v42  ;;  %v1510_v31 = vsel %vm772_vm5, %v1508_v1, %v1509_v25 }
 0x424   : > { %v1409_v56 = vmul.f32 %v1717_v36, %v1402_v2  ;;  %1375 = vrot.lane.b32.xlu0 %v1374_v58, %s1928_s10  ;;  %v1537_v29 = vmul.f32 %v1725_v15, %v1402_v2 }
 0x426   : > { %v1413_v30 = vrot.slane %v1409_v56, 1  ;;  %v1541_v53 = vrot.slane %v1537_v29, 2 }
 0x427   : > { %1431 = vrot.lane.b32.xlu1 %v1430_v0, %s1928_s10 }
 0x428   : > { %v1414_v13 = vsel %vm615_vm4, %v1412_v57, %v1413_v30  ;;  %v1542_v23 = vsel %vm772_vm5, %v1540_v21, %v1541_v53 }
 0x429   : > { %1415 = vrot.lane.b32.xlu0 %v1414_v13, %s1928_s10 }
 0x42b   : > { %1463 = vrot.lane.b32.xlu1 %v1462_v63, %s1928_s10 }
 0x42d   : > { %1447 = vrot.lane.b32.xlu0 %v1446_v47, %s1928_s10 }
 0x42f   : > { %1495 = vrot.lane.b32.xlu1 %v1494_v27, %s1928_s10 }
 0x431   : > { %1479 = vrot.lane.b32.xlu0 %v1478_v11, %s1928_s10 }
 0x433   : > { %1527 = vrot.lane.b32.xlu1 %v1526_v39, %s1928_s10 }
 0x435   : > { %1511 = vrot.lane.b32.xlu0 %v1510_v31, %s1928_s10 }
 0x439   : > { %1543 = vrot.lane.b32.xlu0 %v1542_v23, %s1928_s10  ;;  %s226_s10 = sand.u32 1, %s1910_s19  }
 0x43a   : > { %s1649_s12 = sshll.u32 %s226_s10, 3 }
 0x43b   : > { %s228_s14 = scalar_lea.vmem [#allocation3], %s1649_s12 }
 0x43c   : > { %s1574_s15 = sshll.u32 %s228_s14, 4  ;;  %s1575_s15 = int_to_ptr.vmem [resolvable:$true] %s1574_s15 }
 0x43d   : > { %1554 = vrot.lane.b32.xlu0 %v2298_v17, %s1930_s11  ;;  %s1858_s26 = scalar_lea.vmem %s1575_s15, 128  ;;  %p1865_p0 = scmp.lt.s32.totalorder %s1575_s15, %s1863_s7 }
 0x43e   : > { %p1859_p11 = scmp.ne.s32.totalorder %s1575_s15, %s1858_s26  ;;  %p1866_p1 = scmp.lt.s32.totalorder %s1864_s30, %s1858_s26 }
 0x440   : > { %p1860_p12 = pnand %p1859_p11, %p2000_p5  ;;  %p1867_p2 = por %p1866_p1, %p1865_p0 }
 0x442   : > { %p1861_p13 = pneg %p1860_p12 }
 0x444   : > { %p1868_p3 = pnand %p1867_p2, %p1861_p13 }
 0x470   : > { %v1150_v34 = vpop.permute.xlu1 %1149 }
 0x471   : > { %v1152_v18 = vadd.f32 %v2338_v26, %v1150_v34 }
 0x474   : > { %v1180_v38 = vpop.permute.xlu1 %1179 }
 0x475   : > { %v1165_v36 = vpop.permute.xlu0 %1164 }
 0x476   : > { %v1167_v37 = vadd.f32 %v1165_v36, %v1152_v18 }
 0x478   : > { %v1182_v43 = vadd.f32 %v1180_v38, %v1167_v37 }
 0x47a   : > { %v1195_v40 = vpop.permute.xlu0 %1194 }
 0x47b   : > { %v1197_v3 = vadd.f32 %v1195_v40, %v1182_v43 }
 0x47e   : > { %v1225_v42 = vpop.permute.xlu0 %1224 }
 0x47f   : > { %v1210_v4 = vpop.permute.xlu1 %1209 }
 0x480   : > { %v1212_v5 = vadd.f32 %v1210_v4, %v1197_v3 }
 0x482   : > { %v1227_v44 = vadd.f32 %v1225_v42, %v1212_v5  ;;  %v1255_v62 = vpop.permute.xlu0 %1254 }
 0x484   : > { %v1240_v46 = vpop.permute.xlu1 %1239 }
 0x485   : > { %v1242_v48 = vadd.f32 %v1240_v46, %v1227_v44 }
 0x486   : > { %v1296_v17 = vpop.permute.xlu0 %1295 }
 0x487   : > { %v1257_v2 = vadd.f32 %v1255_v62, %v1242_v48 }
 0x488   : > { %v1276_v58 = vpop.permute.xlu1 %1275 }
 0x489   : > { %v1278_v50 = vadd.f32 %v1276_v58, %v1257_v2 }
 0x48a   : > { %v1336_v45 = vpop.permute.xlu0 %1335 }
 0x48b   : > { %v1298_v55 = vadd.f32 %v1296_v17, %v1278_v50 }
 0x48c   : > { %v1316_v56 = vpop.permute.xlu1 %1315 }
 0x48d   : > { %v1318_v26 = vadd.f32 %v1316_v56, %v1298_v55 }
 0x48f   : > { %v1338_v60 = vadd.f32 %v1336_v45, %v1318_v26 }
 0x491   : > { %v1356_v57 = vpop.permute.xlu1 %1355 }
 0x492   : > { %v1358_v54 = vadd.f32 %v1356_v57, %v1338_v60 }
 0x495   : > { %v1396_v61 = vpop.permute.xlu1 %1395 }
 0x496   : > { %v1376_v9 = vpop.permute.xlu0 %1375 }
 0x497   : > { %v1378_v30 = vadd.f32 %v1376_v9, %v1358_v54 }
 0x499   : > { %v1432_v0 = vpop.permute.xlu1 %1431  ;;  %v1398_v32 = vadd.f32 %v1396_v61, %v1378_v30 }
 0x49b   : > { %v1416_v10 = vpop.permute.xlu0 %1415 }
 0x49c   : > { %v1418_v8 = vadd.f32 %v1416_v10, %v1398_v32 }
 0x49d   : > { %v1464_v7 = vpop.permute.xlu1 %1463 }
 0x49e   : > { %v1434_v12 = vadd.f32 %v1432_v0, %v1418_v8 }
 0x49f   : > { %v1448_v13 = vpop.permute.xlu0 %1447 }
 0x4a0   : > { %v1450_v14 = vadd.f32 %v1448_v13, %v1434_v12 }
 0x4a1   : > { %v1496_v49 = vpop.permute.xlu1 %1495 }
 0x4a2   : > { %v1466_v16 = vadd.f32 %v1464_v7, %v1450_v14 }
 0x4a3   : > { %v1480_v59 = vpop.permute.xlu0 %1479 }
 0x4a4   : > { %v1482_v63 = vadd.f32 %v1480_v59, %v1466_v16 }
 0x4a5   : > { %v1528_v41 = vpop.permute.xlu1 %1527 }
 0x4a6   : > { %v1498_v20 = vadd.f32 %v1496_v49, %v1482_v63 }
 0x4a7   : > { %v1512_v19 = vpop.permute.xlu0 %1511 }
 0x4a8   : > { %v1514_v33 = vadd.f32 %v1512_v19, %v1498_v20 }
 0x4aa   : > { %v1530_v35 = vadd.f32 %v1528_v41, %v1514_v33 }
 0x4ab   : > { %v1544_v47 = vpop.permute.xlu0 %1543 }
 0x4ac   : > { %v1546_v22 = vadd.f32 %v1544_v47, %v1530_v35 }
 0x4ae   : > { %1856 = vtanh.f32 %v1546_v22 }
 0x4af   : > { %v1555_v15 = vpop.permute.xlu0 %1554 }
 0x4bb   : > { %v1857_v24 = vpop.eup %1856 }
 0x4bc   : > { %1549 = vrot.lane.b32.xlu1 %v1857_v24, %s1929_s23  ;;  %s1561_s23 = scalar_lea.sflag [#allocation4], %s226_s10 }
 0x52e   : > { %v1550_v51 = vpop.permute.xlu1 %1549 }
 0x52f   : > { %v1552_v27 = vadd.f32 %v1550_v51, %v2026_v6 }
 0x531   : > { %v1557_v28 = vsel %vm239_vm0, %v1552_v27, %v1555_v15 }
 0x532   : > { %1559 = vst.msk [vmem:[%s228_s14] sm:$0xff] %vm1558_vm8, %v1557_v28 }
 0x533   : > { %1871 = shalt.err (!%p1868_p3)
}
 0x534   : > { %s1872_s6 = scalar_lea.hbm %s2563_s25, 128  ;;  %s1876_s11 = scalar_lea.hbm %s2604_s5, 256 }
 0x535   : > { %p1873_p4 = scmp.ne.s32.totalorder %s2563_s25, %s1872_s6  ;;  %p1877_p9 = scmp.lt.s32.totalorder %s2563_s25, %s2604_s5 }
 0x536   : > { %p1878_p10 = scmp.lt.s32.totalorder %s1876_s11, %s1872_s6 }
 0x537   : > { %p1874_p7 = pnand %p1873_p4, %p2000_p5 }
 0x538   : > { %p1879_p11 = por %p1878_p10, %p1877_p9 }
 0x539   : > { %p1875_p8 = pneg %p1874_p7 }
 0x53b   : > { %p1880_p12 = pnand %p1879_p11, %p1875_p8 }
 0x53d   : > { %1883 = shalt.err (!%p1880_p12)
}
 0x53e   : > { %1730 = dma.vmem_to_hbm [thread:$0]  (%p2000_p5), %s1575_s15, 128, %s2563_s25, %s1561_s23  }
 0x53f PF: > { %p1736_p13 = scmp.ge.s32.totalorder %s1918_s21, 2  ;;  %s1586_s13 = sand.u32 1, %s1906_s18  }
 0x540   : > { %s1587_s14 = scalar_lea.sflag [#allocation4], %s1586_s13 }
 0x541   : > { %p1733_p0 = pnand %p1736_p13, %p2004_p6 }
 0x543   : > { %p1734_p1 = pneg %p1733_p0 }
 0x545   : > { %1901 = dma.done.wait (%p1734_p1), %s1587_s14, 128  }
 0x546   : > { %1903 = vsyncadd (%p1734_p1), %s1587_s14, 4294967168  ;;  %p15_p2 = scmp.ge.s32.totalorder %s1987_s24, 4   ;;  %s2607_s18 = smov %s1910_s19 }
 0x547   : > { %s2608_s19 = smov %s1914_s20  ;;  %s2609_s20 = smov %s1998_s27 }
 0x548   : > { %s2610_s21 = smov %s1987_s24  ;;  %17 = sbr.rel (!%p15_p2) target bundleno = 3 (0x3), region = 78 }
 0x54d   :  { %1592 = vsyncpa [#allocation4], 1 }
 0x54e   :  { %1594 = vsyncpa [#allocation4 + $0x1], 1 }

</bundles_post_ra>
